<compile_context>
chip_gen: v7x
topology: tpu7x:2x2x1
jax: 0.10.0
libtpu: 0.0.40
codegen_flags: <defaults>
</compile_context>

<pallas_src>
import functools

import jax
import jax.numpy as jnp
from jax import lax
from jax.experimental import pallas as pl
from jax.experimental.pallas import tpu as pltpu

BN_EPS = 1e-3                      # norm_cfg eps=0.001
_VMEM_LIMIT = 32 * 1024 * 1024     # safe on v5e/v6e/v7x


def _round_up(x, m):
    return ((x + m - 1) // m) * m


# ----------------------------------------------------------------------------
# Pallas kernel 1: fused SubMConv3d (3x3x3, stride 1) + BN + ReLU [+ residual]
#   grid = (N, D_out, KD);  kd is an "arbitrary" reduction axis.
#   x is pre-padded and W-flattened per depth plane:  x_flat [N, Dp, Lin, Cin]
#   with Lin=(H+3)*Wp, Wp=W+2;  tap (kh,kw) is the row-window starting at
#   kh*Wp+kw, so every tap is a plain 2-D slice + 2-D MXU matmul.
# ----------------------------------------------------------------------------
def _subm_plane_kernel(x_ref, w_ref, s_ref, b_ref, m_ref, *rest,
                       KH, KW, Wp, Lout, has_residual):
    if has_residual:
        id_ref, o_ref, acc_ref = rest
    else:
        o_ref, acc_ref = rest

    kd = pl.program_id(2)

    @pl.when(kd == 0)
    def _init():
        acc_ref[...] = jnp.zeros_like(acc_ref)

    contrib = None
    for kh in range(KH):
        for kw in range(KW):
            off = kh * Wp + kw                      # static python int
            xt = x_ref[pl.ds(off, Lout), :]          # [Lout, Cin] bf16
            part = jnp.dot(xt, w_ref[kh * KW + kw],  # [Cin, Cout] bf16
                           preferred_element_type=jnp.float32)
            contrib = part if contrib is None else contrib + part
    acc_ref[...] += contrib

    @pl.when(kd == pl.num_programs(2) - 1)
    def _finalize():
        y = acc_ref[...] * s_ref[...] + b_ref[...]           # folded BN (f32)
        m = m_ref[...].astype(jnp.float32)                   # [Lout, 1]
        if has_residual:
            y = y * m + id_ref[...].astype(jnp.float32)      # spconv: +=identity
            y = jnp.maximum(y, 0.0)
        else:
            y = jnp.maximum(y, 0.0) * m
        o_ref[...] = y.astype(o_ref.dtype)


def subm_conv_bn_relu(x, w, scale, bias, mask, residual=None):
    """x:[N,D,H,W,Cin] bf16, w:[3,3,3,Cin,Cout], mask:[N,D,H,W,1] -> [N,D,H,W,Cout] bf16."""
    N, D, H, W, Cin = x.shape
    KD, KH, KW = w.shape[:3]
    Cout = w.shape[4]
    Wp = W + 2
    Lin = (H + 3) * Wp          # 1 front / 2+1 back rows of H padding for the tap halo
    Lout = H * Wp               # includes 2 dead columns per row, cropped afterwards

    # pad D by (1,1), H by (1,2), W by (1,1); flatten (H,W) per plane.
    xp = jnp.pad(x.astype(jnp.bfloat16), ((0, 0), (1, 1), (1, 2), (1, 1), (0, 0)))
    Dp = D + 2
    xf = xp.reshape(N, Dp, Lin, Cin)

    w4 = w.reshape(KD, KH * KW, Cin, Cout).astype(jnp.bfloat16)
    s2 = scale.reshape(1, Cout).astype(jnp.float32)
    b2 = bias.reshape(1, Cout).astype(jnp.float32)
    mflat = jnp.pad(mask, ((0, 0), (0, 0), (0, 0), (0, Wp - W), (0, 0))
                    ).reshape(N, D, Lout, 1).astype(jnp.float32)

    args = [xf, w4, s2, b2, mflat]
    in_specs = [
        pl.BlockSpec((None, None, Lin, Cin), lambda n, d, kd: (n, d + kd, 0, 0)),
        pl.BlockSpec((None, KH * KW, Cin, Cout), lambda n, d, kd: (kd, 0, 0, 0)),
        pl.BlockSpec((1, Cout), lambda n, d, kd: (0, 0)),
        pl.BlockSpec((1, Cout), lambda n, d, kd: (0, 0)),
        pl.BlockSpec((None, None, Lout, 1), lambda n, d, kd: (n, d, 0, 0)),
    ]
    id_bytes = 0
    if residual is not None:
        idf = jnp.pad(residual.astype(jnp.bfloat16),
                      ((0, 0), (0, 0), (0, 0), (0, Wp - W), (0, 0))
                      ).reshape(N, D, Lout, Cout)
        args.append(idf)
        in_specs.append(
            pl.BlockSpec((None, None, Lout, Cout), lambda n, d, kd: (n, d, 0, 0)))
        id_bytes = idf.size * 2

    kernel = functools.partial(_subm_plane_kernel, KH=KH, KW=KW, Wp=Wp,
                               Lout=Lout, has_residual=residual is not None)

    flops = 2 * N * D * Lout * KD * KH * KW * Cin * Cout
    bytes_acc = xf.size * 2 * KD + w4.size * 2 + mflat.size * 4 \
        + N * D * Lout * Cout * 2 + id_bytes

    out = pl.pallas_call(
        kernel,
        out_shape=jax.ShapeDtypeStruct((N, D, Lout, Cout), jnp.bfloat16),
        grid=(N, D, KD),
        in_specs=in_specs,
        out_specs=pl.BlockSpec((None, None, Lout, Cout),
                               lambda n, d, kd: (n, d, 0, 0)),
        scratch_shapes=[pltpu.VMEM((Lout, Cout), jnp.float32)],
        compiler_params=pltpu.CompilerParams(
            dimension_semantics=("parallel", "parallel", "arbitrary"),
            vmem_limit_bytes=_VMEM_LIMIT),
        cost_estimate=pl.CostEstimate(flops=flops, transcendentals=0,
                                      bytes_accessed=bytes_acc),
    )(*args)

    # crop the 2 dead columns per row back to [N, D, H, W, Cout]
    return out.reshape(N, D, H, Wp, Cout)[:, :, :, :W, :]


# ----------------------------------------------------------------------------
# Pallas kernel 2: fused GEMM + folded-BN + ReLU + active-mask
#   (used for the 4 strided SparseConv3d layers, which see 8x fewer sites)
# ----------------------------------------------------------------------------
def _gemm_bn_relu_mask_kernel(p_ref, w_ref, s_ref, b_ref, m_ref, o_ref):
    acc = jnp.dot(p_ref[...], w_ref[...], preferred_element_type=jnp.float32)
    y = acc * s_ref[...] + b_ref[...]
    y = jnp.maximum(y, 0.0) * m_ref[...]
    o_ref[...] = y.astype(o_ref.dtype)


def _pick_tm(M, cap=512):
    """Largest tile <= cap that is a multiple of 8 and divides M (prefer >=2 tiles)."""
    divs = [t for t in range(8, min(cap, M) + 1, 8) if M % t == 0]
    if not divs:
        return None
    multi = [t for t in divs if M // t >= 2]
    return max(multi) if multi else max(divs)


def fused_gemm_bn_relu_mask(patches, w2d, scale, bias, mflat):
    """patches:[M,Kc] bf16, w2d:[Kc,Cout] bf16, mflat:[M,1] -> [M,Cout] bf16."""
    M, Kc = patches.shape
    Cout = w2d.shape[1]
    tm = _pick_tm(M)
    if tm is None:                      # rare fallback: tiny/awkward M
        tm = min(512, _round_up(M, 8))
        M_pad = _round_up(M, tm)
        patches = jnp.pad(patches, ((0, M_pad - M), (0, 0)))
        mflat = jnp.pad(mflat, ((0, M_pad - M), (0, 0)))
    else:
        M_pad = M

    s2 = scale.reshape(1, Cout).astype(jnp.float32)
    b2 = bias.reshape(1, Cout).astype(jnp.float32)
    flops = 2 * M_pad * Kc * Cout
    bytes_acc = patches.size * 2 + w2d.size * 2 + mflat.size * 4 + M_pad * Cout * 2

    out = pl.pallas_call(
        _gemm_bn_relu_mask_kernel,
        out_shape=jax.ShapeDtypeStruct((M_pad, Cout), jnp.bfloat16),
        grid=(M_pad // tm,),
        in_specs=[
            pl.BlockSpec((tm, Kc), lambda i: (i, 0)),
            pl.BlockSpec((Kc, Cout), lambda i: (0, 0)),
            pl.BlockSpec((1, Cout), lambda i: (0, 0)),
            pl.BlockSpec((1, Cout), lambda i: (0, 0)),
            pl.BlockSpec((tm, 1), lambda i: (i, 0)),
        ],
        out_specs=pl.BlockSpec((tm, Cout), lambda i: (i, 0)),
        compiler_params=pltpu.CompilerParams(
            dimension_semantics=("parallel",),
            vmem_limit_bytes=_VMEM_LIMIT),
        cost_estimate=pl.CostEstimate(flops=flops, transcendentals=0,
                                      bytes_accessed=bytes_acc),
    )(patches.astype(jnp.bfloat16), w2d.astype(jnp.bfloat16), s2, b2,
      mflat.astype(jnp.float32))
    return out[:M]


# ----------------------------------------------------------------------------
# JAX glue for the strided SparseConv3d layers
# ----------------------------------------------------------------------------
def _im2col(x, ksize, stride, padding):
    """x:[N,D,H,W,C] -> patches [N*Do*Ho*Wo, K*C], (Do,Ho,Wo)."""
    N, D, H, W, C = x.shape
    KD, KH, KW = ksize
    SD, SH, SW = stride
    PD, PH, PW = padding
    Do = (D + 2 * PD - KD) // SD + 1
    Ho = (H + 2 * PH - KH) // SH + 1
    Wo = (W + 2 * PW - KW) // SW + 1
    xp = jnp.pad(x, ((0, 0), (PD, PD), (PH, PH), (PW, PW), (0, 0)))
    cols = []
    for kd in range(KD):
        for kh in range(KH):
            for kw in range(KW):
                sl = xp[:,
                        kd:kd + SD * (Do - 1) + 1:SD,
                        kh:kh + SH * (Ho - 1) + 1:SH,
                        kw:kw + SW * (Wo - 1) + 1:SW, :]
                cols.append(sl)
    patches = jnp.stack(cols, axis=4)                       # [N,Do,Ho,Wo,K,C]
    return patches.reshape(N * Do * Ho * Wo, KD * KH * KW * C), (Do, Ho, Wo)


def sparse_conv_bn_relu(x, mask, w, scale, bias, ksize, stride, padding):
    N, D, H, W, Cin = x.shape
    Cout = w.shape[-1]
    patches, (Do, Ho, Wo) = _im2col(x.astype(jnp.bfloat16), ksize, stride, padding)
    # spconv SparseConv3d active set: any tap covers an active input
    out_mask = lax.reduce_window(
        mask, jnp.float32(0.0), lax.max,
        (1,) + tuple(ksize) + (1,),
        (1,) + tuple(stride) + (1,),
        ((0, 0), (padding[0], padding[0]), (padding[1], padding[1]),
         (padding[2], padding[2]), (0, 0)))
    out_mask = (out_mask > 0.0).astype(jnp.float32)
    mflat = out_mask.reshape(-1, 1)
    w2d = w.reshape(-1, Cout)
    y = fused_gemm_bn_relu_mask(patches, w2d, scale, bias, mflat)
    return y.reshape(N, Do, Ho, Wo, Cout), out_mask


# ----------------------------------------------------------------------------
# Parameters (ResNet FHD architecture) and forward pass
# ----------------------------------------------------------------------------
def _conv_params(key, k, cin, cout, bias):
    kw_, kb = jax.random.split(key)
    fan_in = k[0] * k[1] * k[2] * cin
    w = jax.random.normal(kw_, (k[0], k[1], k[2], cin, cout), jnp.float32)
    w = w * (2.0 / fan_in) ** 0.5
    cb = (0.01 * jax.random.normal(kb, (cout,), jnp.float32)
          if bias else jnp.zeros((cout,), jnp.float32))
    return w, cb


def _bn_params(key, c):
    k1, k2, k3, k4 = jax.random.split(key, 4)
    gamma = 1.0 + 0.1 * jax.random.normal(k1, (c,), jnp.float32)
    beta = 0.1 * jax.random.normal(k2, (c,), jnp.float32)
    rmean = 0.05 * jax.random.normal(k3, (c,), jnp.float32)
    rvar = 1.0 + 0.1 * jax.random.uniform(k4, (c,), jnp.float32)
    return gamma, beta, rmean, rvar


def _fold_bn(bn, conv_bias):
    gamma, beta, rmean, rvar = bn
    scale = gamma / jnp.sqrt(rvar + BN_EPS)
    bias = beta - rmean * scale + conv_bias * scale
    return scale, bias


def _arch(num_input_features):
    C = num_input_features
    return [
        ("subm", C, 16),
        ("block", 16), ("block", 16),
        ("spconv", 16, 32, (3, 3, 3), (2, 2, 2), (1, 1, 1)),
        ("block", 32), ("block", 32),
        ("spconv", 32, 64, (3, 3, 3), (2, 2, 2), (1, 1, 1)),
        ("block", 64), ("block", 64),
        ("spconv", 64, 128, (3, 3, 3), (2, 2, 2), (0, 1, 1)),
        ("block", 128), ("block", 128),
        ("spconv", 128, 128, (3, 1, 1), (2, 1, 1), (0, 0, 0)),
    ]


def init_params(key, num_input_features):
    params = []
    for spec in _arch(num_input_features):
        if spec[0] == "subm":
            _, cin, cout = spec
            key, k1, k2 = jax.random.split(key, 3)
            w, cb = _conv_params(k1, (3, 3, 3), cin, cout, bias=False)
            params.append(dict(type="subm", w=w, cb=cb, bn=_bn_params(k2, cout)))
        elif spec[0] == "block":
            _, c = spec
            key, k1, k2, k3, k4 = jax.random.split(key, 5)
            w1, cb1 = _conv_params(k1, (3, 3, 3), c, c, bias=True)
            w2, cb2 = _conv_params(k3, (3, 3, 3), c, c, bias=True)
            params.append(dict(type="block", w1=w1, cb1=cb1, bn1=_bn_params(k2, c),
                               w2=w2, cb2=cb2, bn2=_bn_params(k4, c)))
        else:
            _, cin, cout, k, s, p = spec
            key, k1, k2 = jax.random.split(key, 3)
            w, cb = _conv_params(k1, k, cin, cout, bias=False)
            params.append(dict(type="spconv", w=w, cb=cb, bn=_bn_params(k2, cout),
                               k=k, s=s, p=p))
    return params


def sp_middle_resnet_fhd_forward(params, voxel_features, coors, batch_size,
                                 input_shape):
    # sparse_shape = input_shape[::-1] + [1, 0, 0]   (input_shape is [W, H, D])
    D = int(input_shape[2]) + 1
    H = int(input_shape[1])
    W = int(input_shape[0])
    C = voxel_features.shape[1]
    coors = coors.astype(jnp.int32)

    # densify (SparseConvTensor -> dense, channels-last, bf16)
    x = jnp.zeros((batch_size, D, H, W, C), jnp.bfloat16)
    x = x.at[coors[:, 0], coors[:, 1], coors[:, 2], coors[:, 3]].set(
        voxel_features.astype(jnp.bfloat16))
    mask = jnp.zeros((batch_size, D, H, W, 1), jnp.float32)
    mask = mask.at[coors[:, 0], coors[:, 1], coors[:, 2], coors[:, 3]].set(1.0)

    for p in params:
        if p["type"] == "subm":
            s, b = _fold_bn(p["bn"], p["cb"])
            x = subm_conv_bn_relu(x, p["w"], s, b, mask)
        elif p["type"] == "block":
            identity = x
            s1, b1 = _fold_bn(p["bn1"], p["cb1"])
            x = subm_conv_bn_relu(x, p["w1"], s1, b1, mask)
            s2, b2 = _fold_bn(p["bn2"], p["cb2"])
            x = subm_conv_bn_relu(x, p["w2"], s2, b2, mask, residual=identity)
        else:
            s, b = _fold_bn(p["bn"], p["cb"])
            x, mask = sparse_conv_bn_relu(x, mask, p["w"], s, b,
                                          p["k"], p["s"], p["p"])

    # ret.dense() -> [N, C, D, H, W]; then view(N, C*D, H, W)
    N, Df, Hf, Wf, Cf = x.shape
    ret = jnp.transpose(x, (0, 4, 1, 2, 3))
    return ret.reshape(N, Cf * Df, Hf, Wf).astype(jnp.float32)


# ----------------------------------------------------------------------------
if __name__ == "__main__":
    key = jax.random.PRNGKey(0)
    batch_size = 2
    num_input_features = 32          # constructor arg (kept small for the demo)
    input_shape = [16, 16, 24]       # [W, H, D] grid -> sparse D = 25
    D_in, H_in, W_in = input_shape[2], input_shape[1], input_shape[0]
    voxels_per_batch = 200

    kp, kf, kc = jax.random.split(key, 3)
    params = init_params(kp, num_input_features)

    # unique active voxel coordinates per batch: (batch_idx, z, y, x)
    coors_list = []
    for b in range(batch_size):
        kb = jax.random.fold_in(kc, b)
        flat = jax.random.permutation(kb, D_in * H_in * W_in)[:voxels_per_batch]
        z = flat // (H_in * W_in)
        y = (flat // W_in) % H_in
        xx = flat % W_in
        bcol = jnp.full_like(z, b)
        coors_list.append(jnp.stack([bcol, z, y, xx], axis=1))
    coors = jnp.concatenate(coors_list, axis=0).astype(jnp.int32)

    voxel_features = jax.random.normal(
        kf, (coors.shape[0], num_input_features), jnp.float32)

    out = sp_middle_resnet_fhd_forward(
        params, voxel_features, coors, batch_size, input_shape)
    out = jax.block_until_ready(out)

    # (25,16,16) -> 2x2x2 strides -> (3,2,2) -> (2,1,1) stride -> (1,2,2); C=128
    assert out.shape == (batch_size, 128 * 1, 2, 2), out.shape
    assert bool(jnp.all(jnp.isfinite(out)))
    print("KERNEL_OK")
</pallas_src>

<mosaic_0001>
module attributes {stable_mosaic.version = 11 : i64} {
  func.func @_subm_plane_kernel(%arg0: i32, %arg1: i32, %arg2: i32, %arg3: memref<1x1x342x32xbf16, #tpu.memory_space<vmem>>, %arg4: memref<1x9x32x16xbf16, #tpu.memory_space<vmem>>, %arg5: memref<1x16xf32, #tpu.memory_space<vmem>>, %arg6: memref<1x16xf32, #tpu.memory_space<vmem>>, %arg7: memref<1x1x288x1xf32, #tpu.memory_space<vmem>>, %arg8: memref<1x1x288x16xbf16, #tpu.memory_space<vmem>>, %arg9: memref<288x16xf32, #tpu.memory_space<vmem>>) attributes {dimension_semantics = [#tpu.dimension_semantics<parallel>, #tpu.dimension_semantics<parallel>, #tpu.dimension_semantics<arbitrary>], iteration_bounds = array<i64: 2, 25, 3>, scalar_prefetch = 0 : i64, scratch_operands = 1 : i64, tpu.core_type = #tpu.core_type<tc>, window_params = [{transform_indices = @transform_0, window_bounds = array<i64: 1, 1, 342, 32>}, {transform_indices = @transform_1, window_bounds = array<i64: 1, 9, 32, 16>}, {pipeline_mode = #tpu.pipeline_mode<synchronous>, transform_indices = @transform_2, window_bounds = array<i64: 1, 16>}, {pipeline_mode = #tpu.pipeline_mode<synchronous>, transform_indices = @transform_3, window_bounds = array<i64: 1, 16>}, {transform_indices = @transform_4, window_bounds = array<i64: 1, 1, 288, 1>}, {transform_indices = @transform_5, window_bounds = array<i64: 1, 1, 288, 16>}]} {
    %c0_i32 = arith.constant 0 : i32
    %0 = arith.cmpi eq, %arg2, %c0_i32 : i32
    %1 = arith.extui %0 : i1 to i32
    %c0_i32_0 = arith.constant 0 : i32
    %2 = arith.cmpi ne, %1, %c0_i32_0 : i32
    scf.if %2 {
      %cst_71 = arith.constant 0.000000e+00 : f32
      %62 = vector.broadcast %cst_71 : f32 to vector<288x16xf32>
      %c0_72 = arith.constant 0 : index
      %c0_73 = arith.constant 0 : index
      %63 = vector.load %arg9[%c0_72, %c0_73] : memref<288x16xf32, #tpu.memory_space<vmem>>, vector<288x16xf32>
      tpu.vector_store %arg9[%c0_72, %c0_73], %62 {strides = array<i32>} : memref<288x16xf32, #tpu.memory_space<vmem>>, vector<288x16xf32>,
    } else {
    }
    %c0 = arith.constant 0 : index
    %c0_1 = arith.constant 0 : index
    %c0_2 = arith.constant 0 : index
    %c0_3 = arith.constant 0 : index
    %3 = vector.load %arg3[%c0, %c0_1, %c0_2, %c0_3] : memref<1x1x342x32xbf16, #tpu.memory_space<vmem>>, vector<1x1x288x32xbf16>
    %4 = vector.shape_cast %3 : vector<1x1x288x32xbf16> to vector<288x32xbf16>
    %c0_4 = arith.constant 0 : index
    %c0_5 = arith.constant 0 : index
    %c0_6 = arith.constant 0 : index
    %c0_7 = arith.constant 0 : index
    %5 = vector.load %arg4[%c0_4, %c0_5, %c0_6, %c0_7] : memref<1x9x32x16xbf16, #tpu.memory_space<vmem>>, vector<1x1x32x16xbf16>
    %6 = vector.shape_cast %5 : vector<1x1x32x16xbf16> to vector<32x16xbf16>
    %cst = arith.constant dense<0.000000e+00> : vector<288x16xf32>
    %7 = tpu.matmul %4, %6, %cst {dimension_numbers = #tpu.dot_dimension_numbers<[1], [0], [0], [1], [0, 0, 1, 1], [], []>} : vector<288x32xbf16>, vector<32x16xbf16>, vector<288x16xf32> -> vector<288x16xf32>
    %c0_8 = arith.constant 0 : index
    %c0_9 = arith.constant 0 : index
    %c1 = arith.constant 1 : index
    %c0_10 = arith.constant 0 : index
    %8 = vector.load %arg3[%c0_8, %c0_9, %c1, %c0_10] : memref<1x1x342x32xbf16, #tpu.memory_space<vmem>>, vector<1x1x288x32xbf16>
    %9 = vector.shape_cast %8 : vector<1x1x288x32xbf16> to vector<288x32xbf16>
    %c0_11 = arith.constant 0 : index
    %c1_12 = arith.constant 1 : index
    %c0_13 = arith.constant 0 : index
    %c0_14 = arith.constant 0 : index
    %10 = vector.load %arg4[%c0_11, %c1_12, %c0_13, %c0_14] : memref<1x9x32x16xbf16, #tpu.memory_space<vmem>>, vector<1x1x32x16xbf16>
    %11 = vector.shape_cast %10 : vector<1x1x32x16xbf16> to vector<32x16xbf16>
    %cst_15 = arith.constant dense<0.000000e+00> : vector<288x16xf32>
    %12 = tpu.matmul %9, %11, %cst_15 {dimension_numbers = #tpu.dot_dimension_numbers<[1], [0], [0], [1], [0, 0, 1, 1], [], []>} : vector<288x32xbf16>, vector<32x16xbf16>, vector<288x16xf32> -> vector<288x16xf32>
    %13 = arith.addf %7, %12 : vector<288x16xf32>
    %c0_16 = arith.constant 0 : index
    %c0_17 = arith.constant 0 : index
    %c2 = arith.constant 2 : index
    %c0_18 = arith.constant 0 : index
    %14 = vector.load %arg3[%c0_16, %c0_17, %c2, %c0_18] : memref<1x1x342x32xbf16, #tpu.memory_space<vmem>>, vector<1x1x288x32xbf16>
    %15 = vector.shape_cast %14 : vector<1x1x288x32xbf16> to vector<288x32xbf16>
    %c0_19 = arith.constant 0 : index
    %c2_20 = arith.constant 2 : index
    %c0_21 = arith.constant 0 : index
    %c0_22 = arith.constant 0 : index
    %16 = vector.load %arg4[%c0_19, %c2_20, %c0_21, %c0_22] : memref<1x9x32x16xbf16, #tpu.memory_space<vmem>>, vector<1x1x32x16xbf16>
    %17 = vector.shape_cast %16 : vector<1x1x32x16xbf16> to vector<32x16xbf16>
    %cst_23 = arith.constant dense<0.000000e+00> : vector<288x16xf32>
    %18 = tpu.matmul %15, %17, %cst_23 {dimension_numbers = #tpu.dot_dimension_numbers<[1], [0], [0], [1], [0, 0, 1, 1], [], []>} : vector<288x32xbf16>, vector<32x16xbf16>, vector<288x16xf32> -> vector<288x16xf32>
    %19 = arith.addf %13, %18 : vector<288x16xf32>
    %c0_24 = arith.constant 0 : index
    %c0_25 = arith.constant 0 : index
    %c18 = arith.constant 18 : index
    %c0_26 = arith.constant 0 : index
    %20 = vector.load %arg3[%c0_24, %c0_25, %c18, %c0_26] : memref<1x1x342x32xbf16, #tpu.memory_space<vmem>>, vector<1x1x288x32xbf16>
    %21 = vector.shape_cast %20 : vector<1x1x288x32xbf16> to vector<288x32xbf16>
    %c0_27 = arith.constant 0 : index
    %c3 = arith.constant 3 : index
    %c0_28 = arith.constant 0 : index
    %c0_29 = arith.constant 0 : index
    %22 = vector.load %arg4[%c0_27, %c3, %c0_28, %c0_29] : memref<1x9x32x16xbf16, #tpu.memory_space<vmem>>, vector<1x1x32x16xbf16>
    %23 = vector.shape_cast %22 : vector<1x1x32x16xbf16> to vector<32x16xbf16>
    %cst_30 = arith.constant dense<0.000000e+00> : vector<288x16xf32>
    %24 = tpu.matmul %21, %23, %cst_30 {dimension_numbers = #tpu.dot_dimension_numbers<[1], [0], [0], [1], [0, 0, 1, 1], [], []>} : vector<288x32xbf16>, vector<32x16xbf16>, vector<288x16xf32> -> vector<288x16xf32>
    %25 = arith.addf %19, %24 : vector<288x16xf32>
    %c0_31 = arith.constant 0 : index
    %c0_32 = arith.constant 0 : index
    %c19 = arith.constant 19 : index
    %c0_33 = arith.constant 0 : index
    %26 = vector.load %arg3[%c0_31, %c0_32, %c19, %c0_33] : memref<1x1x342x32xbf16, #tpu.memory_space<vmem>>, vector<1x1x288x32xbf16>
    %27 = vector.shape_cast %26 : vector<1x1x288x32xbf16> to vector<288x32xbf16>
    %c0_34 = arith.constant 0 : index
    %c4 = arith.constant 4 : index
    %c0_35 = arith.constant 0 : index
    %c0_36 = arith.constant 0 : index
    %28 = vector.load %arg4[%c0_34, %c4, %c0_35, %c0_36] : memref<1x9x32x16xbf16, #tpu.memory_space<vmem>>, vector<1x1x32x16xbf16>
    %29 = vector.shape_cast %28 : vector<1x1x32x16xbf16> to vector<32x16xbf16>
    %cst_37 = arith.constant dense<0.000000e+00> : vector<288x16xf32>
    %30 = tpu.matmul %27, %29, %cst_37 {dimension_numbers = #tpu.dot_dimension_numbers<[1], [0], [0], [1], [0, 0, 1, 1], [], []>} : vector<288x32xbf16>, vector<32x16xbf16>, vector<288x16xf32> -> vector<288x16xf32>
    %31 = arith.addf %25, %30 : vector<288x16xf32>
    %c0_38 = arith.constant 0 : index
    %c0_39 = arith.constant 0 : index
    %c20 = arith.constant 20 : index
    %c0_40 = arith.constant 0 : index
    %32 = vector.load %arg3[%c0_38, %c0_39, %c20, %c0_40] : memref<1x1x342x32xbf16, #tpu.memory_space<vmem>>, vector<1x1x288x32xbf16>
    %33 = vector.shape_cast %32 : vector<1x1x288x32xbf16> to vector<288x32xbf16>
    %c0_41 = arith.constant 0 : index
    %c5 = arith.constant 5 : index
    %c0_42 = arith.constant 0 : index
    %c0_43 = arith.constant 0 : index
    %34 = vector.load %arg4[%c0_41, %c5, %c0_42, %c0_43] : memref<1x9x32x16xbf16, #tpu.memory_space<vmem>>, vector<1x1x32x16xbf16>
    %35 = vector.shape_cast %34 : vector<1x1x32x16xbf16> to vector<32x16xbf16>
    %cst_44 = arith.constant dense<0.000000e+00> : vector<288x16xf32>
    %36 = tpu.matmul %33, %35, %cst_44 {dimension_numbers = #tpu.dot_dimension_numbers<[1], [0], [0], [1], [0, 0, 1, 1], [], []>} : vector<288x32xbf16>, vector<32x16xbf16>, vector<288x16xf32> -> vector<288x16xf32>
    %37 = arith.addf %31, %36 : vector<288x16xf32>
    %c0_45 = arith.constant 0 : index
    %c0_46 = arith.constant 0 : index
    %c36 = arith.constant 36 : index
    %c0_47 = arith.constant 0 : index
    %38 = vector.load %arg3[%c0_45, %c0_46, %c36, %c0_47] : memref<1x1x342x32xbf16, #tpu.memory_space<vmem>>, vector<1x1x288x32xbf16>
    %39 = vector.shape_cast %38 : vector<1x1x288x32xbf16> to vector<288x32xbf16>
    %c0_48 = arith.constant 0 : index
    %c6 = arith.constant 6 : index
    %c0_49 = arith.constant 0 : index
    %c0_50 = arith.constant 0 : index
    %40 = vector.load %arg4[%c0_48, %c6, %c0_49, %c0_50] : memref<1x9x32x16xbf16, #tpu.memory_space<vmem>>, vector<1x1x32x16xbf16>
    %41 = vector.shape_cast %40 : vector<1x1x32x16xbf16> to vector<32x16xbf16>
    %cst_51 = arith.constant dense<0.000000e+00> : vector<288x16xf32>
    %42 = tpu.matmul %39, %41, %cst_51 {dimension_numbers = #tpu.dot_dimension_numbers<[1], [0], [0], [1], [0, 0, 1, 1], [], []>} : vector<288x32xbf16>, vector<32x16xbf16>, vector<288x16xf32> -> vector<288x16xf32>
    %43 = arith.addf %37, %42 : vector<288x16xf32>
    %c0_52 = arith.constant 0 : index
    %c0_53 = arith.constant 0 : index
    %c37 = arith.constant 37 : index
    %c0_54 = arith.constant 0 : index
    %44 = vector.load %arg3[%c0_52, %c0_53, %c37, %c0_54] : memref<1x1x342x32xbf16, #tpu.memory_space<vmem>>, vector<1x1x288x32xbf16>
    %45 = vector.shape_cast %44 : vector<1x1x288x32xbf16> to vector<288x32xbf16>
    %c0_55 = arith.constant 0 : index
    %c7 = arith.constant 7 : index
    %c0_56 = arith.constant 0 : index
    %c0_57 = arith.constant 0 : index
    %46 = vector.load %arg4[%c0_55, %c7, %c0_56, %c0_57] : memref<1x9x32x16xbf16, #tpu.memory_space<vmem>>, vector<1x1x32x16xbf16>
    %47 = vector.shape_cast %46 : vector<1x1x32x16xbf16> to vector<32x16xbf16>
    %cst_58 = arith.constant dense<0.000000e+00> : vector<288x16xf32>
    %48 = tpu.matmul %45, %47, %cst_58 {dimension_numbers = #tpu.dot_dimension_numbers<[1], [0], [0], [1], [0, 0, 1, 1], [], []>} : vector<288x32xbf16>, vector<32x16xbf16>, vector<288x16xf32> -> vector<288x16xf32>
    %49 = arith.addf %43, %48 : vector<288x16xf32>
    %c0_59 = arith.constant 0 : index
    %c0_60 = arith.constant 0 : index
    %c38 = arith.constant 38 : index
    %c0_61 = arith.constant 0 : index
    %50 = vector.load %arg3[%c0_59, %c0_60, %c38, %c0_61] : memref<1x1x342x32xbf16, #tpu.memory_space<vmem>>, vector<1x1x288x32xbf16>
    %51 = vector.shape_cast %50 : vector<1x1x288x32xbf16> to vector<288x32xbf16>
    %c0_62 = arith.constant 0 : index
    %c8 = arith.constant 8 : index
    %c0_63 = arith.constant 0 : index
    %c0_64 = arith.constant 0 : index
    %52 = vector.load %arg4[%c0_62, %c8, %c0_63, %c0_64] : memref<1x9x32x16xbf16, #tpu.memory_space<vmem>>, vector<1x1x32x16xbf16>
    %53 = vector.shape_cast %52 : vector<1x1x32x16xbf16> to vector<32x16xbf16>
    %cst_65 = arith.constant dense<0.000000e+00> : vector<288x16xf32>
    %54 = tpu.matmul %51, %53, %cst_65 {dimension_numbers = #tpu.dot_dimension_numbers<[1], [0], [0], [1], [0, 0, 1, 1], [], []>} : vector<288x32xbf16>, vector<32x16xbf16>, vector<288x16xf32> -> vector<288x16xf32>
    %55 = arith.addf %49, %54 : vector<288x16xf32>
    %c0_66 = arith.constant 0 : index
    %c0_67 = arith.constant 0 : index
    %56 = vector.load %arg9[%c0_66, %c0_67] : memref<288x16xf32, #tpu.memory_space<vmem>>, vector<288x16xf32>
    %57 = arith.addf %56, %55 : vector<288x16xf32>
    %c0_68 = arith.constant 0 : index
    %c0_69 = arith.constant 0 : index
    %58 = vector.load %arg9[%c0_68, %c0_69] : memref<288x16xf32, #tpu.memory_space<vmem>>, vector<288x16xf32>
    tpu.vector_store %arg9[%c0_68, %c0_69], %57 {strides = array<i32>} : memref<288x16xf32, #tpu.memory_space<vmem>>, vector<288x16xf32>,
    %c2_i32 = arith.constant 2 : i32
    %59 = arith.cmpi eq, %arg2, %c2_i32 : i32
    %60 = arith.extui %59 : i1 to i32
    %c0_i32_70 = arith.constant 0 : i32
    %61 = arith.cmpi ne, %60, %c0_i32_70 : i32
    scf.if %61 {
      %c0_71 = arith.constant 0 : index
      %c0_72 = arith.constant 0 : index
      %62 = vector.load %arg9[%c0_71, %c0_72] : memref<288x16xf32, #tpu.memory_space<vmem>>, vector<288x16xf32>
      %c0_73 = arith.constant 0 : index
      %c0_74 = arith.constant 0 : index
      %63 = vector.load %arg5[%c0_73, %c0_74] : memref<1x16xf32, #tpu.memory_space<vmem>>, vector<1x16xf32>
      %64 = vector.broadcast %63 : vector<1x16xf32> to vector<288x16xf32>
      %65 = arith.mulf %62, %64 : vector<288x16xf32>
      %c0_75 = arith.constant 0 : index
      %c0_76 = arith.constant 0 : index
      %66 = vector.load %arg6[%c0_75, %c0_76] : memref<1x16xf32, #tpu.memory_space<vmem>>, vector<1x16xf32>
      %67 = vector.broadcast %66 : vector<1x16xf32> to vector<288x16xf32>
      %68 = arith.addf %65, %67 : vector<288x16xf32>
      %c0_77 = arith.constant 0 : index
      %c0_78 = arith.constant 0 : index
      %c0_79 = arith.constant 0 : index
      %c0_80 = arith.constant 0 : index
      %69 = vector.load %arg7[%c0_77, %c0_78, %c0_79, %c0_80] : memref<1x1x288x1xf32, #tpu.memory_space<vmem>>, vector<1x1x288x1xf32>
      %70 = vector.shape_cast %69 : vector<1x1x288x1xf32> to vector<288x1xf32>
      %cst_81 = arith.constant 0.000000e+00 : f32
      %71 = vector.broadcast %cst_81 : f32 to vector<288x16xf32>
      %72 = arith.maximumf %68, %71 : vector<288x16xf32>
      %73 = vector.broadcast %70 : vector<288x1xf32> to vector<288x16xf32>
      %74 = arith.mulf %72, %73 : vector<288x16xf32>
      %75 = arith.truncf %74 : vector<288x16xf32> to vector<288x16xbf16>
      %c0_82 = arith.constant 0 : index
      %c0_83 = arith.constant 0 : index
      %c0_84 = arith.constant 0 : index
      %c0_85 = arith.constant 0 : index
      %76 = vector.load %arg8[%c0_82, %c0_83, %c0_84, %c0_85] : memref<1x1x288x16xbf16, #tpu.memory_space<vmem>>, vector<1x1x288x16xbf16>
      %77 = vector.shape_cast %76 : vector<1x1x288x16xbf16> to vector<288x16xbf16>
      %78 = vector.shape_cast %75 : vector<288x16xbf16> to vector<1x1x288x16xbf16>
      tpu.vector_store %arg8[%c0_82, %c0_83, %c0_84, %c0_85], %78 {strides = array<i32>} : memref<1x1x288x16xbf16, #tpu.memory_space<vmem>>, vector<1x1x288x16xbf16>,
    } else {
    }
    return
  }
  func.func @transform_0(%arg0: i32, %arg1: i32, %arg2: i32) -> (i32, i32, i32, i32) {
    %0 = arith.addi %arg1, %arg2 : i32
    %c0_i32 = arith.constant 0 : i32
    %c0_i32_0 = arith.constant 0 : i32
    %c0_i32_1 = arith.constant 0 : i32
    return %arg0, %0, %c0_i32, %c0_i32_0 : i32, i32, i32, i32
  }
  func.func @transform_1(%arg0: i32, %arg1: i32, %arg2: i32) -> (i32, i32, i32, i32) {
    %c0_i32 = arith.constant 0 : i32
    %c0_i32_0 = arith.constant 0 : i32
    %c0_i32_1 = arith.constant 0 : i32
    %c0_i32_2 = arith.constant 0 : i32
    return %arg2, %c0_i32, %c0_i32_0, %c0_i32_1 : i32, i32, i32, i32
  }
  func.func @transform_2(%arg0: i32, %arg1: i32, %arg2: i32) -> (i32, i32) {
    %c0_i32 = arith.constant 0 : i32
    %c0_i32_0 = arith.constant 0 : i32
    %c0_i32_1 = arith.constant 0 : i32
    return %c0_i32, %c0_i32_0 : i32, i32
  }
  func.func @transform_3(%arg0: i32, %arg1: i32, %arg2: i32) -> (i32, i32) {
    %c0_i32 = arith.constant 0 : i32
    %c0_i32_0 = arith.constant 0 : i32
    %c0_i32_1 = arith.constant 0 : i32
    return %c0_i32, %c0_i32_0 : i32, i32
  }
  func.func @transform_4(%arg0: i32, %arg1: i32, %arg2: i32) -> (i32, i32, i32, i32) {
    %c0_i32 = arith.constant 0 : i32
    %c0_i32_0 = arith.constant 0 : i32
    %c0_i32_1 = arith.constant 0 : i32
    return %arg0, %arg1, %c0_i32, %c0_i32_0 : i32, i32, i32, i32
  }
  func.func @transform_5(%arg0: i32, %arg1: i32, %arg2: i32) -> (i32, i32, i32, i32) {
    %c0_i32 = arith.constant 0 : i32
    %c0_i32_0 = arith.constant 0 : i32
    %c0_i32_1 = arith.constant 0 : i32
    return %arg0, %arg1, %c0_i32, %c0_i32_0 : i32, i32, i32, i32
  }
}

</mosaic_0001>

<bundles_post_ra>
// kernel: tpu_custom_call.1
= control target key start
LH: loop header
LB: loop body
LE: loop exit
PB: predicated region body
PF: predicated region fallthrough
CT: control target
= control target key end

     0   :  { %s6202_s18 = smov 0   ;;  %s6204_s19 = smov 0   ;;  %s7364_s0 = inlined_call_operand.vmem [shape: bf16[2,27,342,32], index: 0, kind: input, shape index: {}]   ;;  %s7365_s1 = inlined_call_operand.vmem [shape: bf16[3,9,32,16], index: 1, kind: input, shape index: {}]   ;;  %s7366_s2 = inlined_call_operand.vmem [shape: f32[1,16], index: 2, kind: input, shape index: {}]   ;;  %s7367_s3 = inlined_call_operand.vmem [shape: f32[1,16], index: 3, kind: input, shape index: {}]   ;;  %s7368_s4 = inlined_call_operand.vmem [shape: f32[2,25,288,1], index: 4, kind: input, shape index: {}]   ;;  %s7369_s5 = inlined_call_operand.vmem [shape: bf16[2,25,288,16], index: 5, kind: output, shape index: {}]  }
   0x1   :  { %s6206_s20 = smov 0   ;;  %s6208_s21 = smov 0  }
   0x2   :  { %s6210_s22 = smov 0   ;;  %s6212_s23 = smov 0  }
   0x3   :  { %s6214_s24 = smov 0  }
   0x4 LB: > { %s27_s25 = sadd.s32 1, %s6156_s21  ;;  %s30_s26 = sadd.s32 1, %s6160_s22  ;;  %s6168_s24 = sphi %s6214_s24, %s15_s24   ;;  %s6164_s23 = sphi %s6212_s23, %s7379_s23   ;;  %s6160_s22 = sphi %s6210_s22, %s7378_s22   ;;  %s6156_s21 = sphi %s6208_s21, %s7377_s21   ;;  %s6152_s20 = sphi %s6206_s20, %s7376_s20   ;;  %s6148_s19 = sphi %s6204_s19, %s7375_s19   ;;  %s6144_s18 = sphi %s6202_s18, %s7374_s18  }
   0x5   : > { %p28_p0 = scmp.ge.s32.totalorder %s27_s25, 3  ;;  %p4768_p1 = scmp.ge.s32.totalorder %s6168_s24, 1 }
   0x6   : > { %p244_p2 = scmp.lt.s32.totalorder %s6168_s24, 151  ;;  %s34_s27 = sadd.s32 1, %s6164_s23 }
   0x7   : > { %s7381_s25 = smov (%p28_p0, %s27_s25), 0  ;;  %s7383_s26 = smov (!%p28_p0, %s30_s26), %s6160_s22 }
   0x8   : > { %p245_p3 = pnand %p4768_p1, %p244_p2  ;;  %p32_p4 = scmp.ge.s32.totalorder %s7383_s26, 25 }
   0x9   : > { %s295_s28 = sadd.s32 (!%p245_p3), %s6144_s18, %s6148_s19  ;;  %p296_p6 = scmp.lt.s32.totalorder (!%p245_p3), %s6152_s20, 1 }
   0xa   : > { %s7385_s26 = smov (%p32_p4, %s7383_s26), 0  ;;  %s7387_s27 = smov (!%p32_p4, %s34_s27), %s6164_s23 }
   0xb   : > { %7370 = sst [smem:[#allocation3_spill]] %s7385_s26  ;;  %p36_p5 = scmp.ge.s32.totalorder %s7387_s27, 2 }
   0xc   : > { %248 = sbr.rel (%p245_p3) target bundleno = 772 (0x304), region = 40  ;;  %p298_p7 = scmp.lt.s32.totalorder (!%p245_p3), %s295_s28, 26 }
   0xd   : > { %s7389_s27 = smov (%p36_p5, %s7387_s27), 0  ;;  %p306_p8 = scmp.lt.s32.totalorder (!%p245_p3), %s6144_s18, 2 }
   0xe   : > { %7371 = sst [smem:[#allocation4_spill]] %s7389_s27  ;;  %p313_p9 = scmp.lt.s32.totalorder (!%p245_p3), %s6148_s19, 24 }
   0xf   : > { %p4773_p10 = scmp.ne.s32.totalorder (!%p245_p3), %s6144_s18, 0 }
  0x13   : > { %s7391_s20 = smov (!%p296_p6, %s6152_s20), 1  ;;  %s7393_s28 = smov (!%p298_p7, %s295_s28), 26 }
  0x14   : > { %s5958_s29 = smul.u32 1161, %s7391_s20  ;;  %s7395_s19 = smov (!%p313_p9, %s6148_s19), 24  ;;  %vm334_vm0 = vcmask (!%p4773_p10), 130048   ;;  %v6170_v0 = vmov (!%p4773_p10), 0.0  }
  0x15   : > { %s5957_s30 = smul.u32 43, %s7393_s28  ;;  %335 = vst.msk [vmem:[#allocation2] sm:$0xff] (!%p4773_p10), %vm334_vm0, %v6170_v0  ;;  %336 = vst.msk [vmem:[#allocation2 + $0x8] sm:$0xff] (!%p4773_p10), %vm334_vm0, %v6170_v0 }
  0x16   : > { %s307_s6 = scalar_select %p306_p8, %s6144_s18, 2 }
  0x17   : > { %s302_s7 = sadd.s32 %s5958_s29, %s5957_s30  ;;  %s5961_s16 = smul.u32 900, %s7391_s20  ;;  %337 = vst.msk [vmem:[#allocation2 + $0x10] sm:$0xff] (!%p4773_p10), %vm334_vm0, %v6170_v0  ;;  %338 = vst.msk [vmem:[#allocation2 + $0x18] sm:$0xff] (!%p4773_p10), %vm334_vm0, %v6170_v0 }
  0x18   : > { %s4769_s8 = sshll.u32 %s302_s7, 2  ;;  %s5959_s9 = smul.u32 144, %s307_s6  ;;  %339 = vst.msk [vmem:[#allocation2 + $0x20] sm:$0xff] (!%p4773_p10), %vm334_vm0, %v6170_v0  ;;  %340 = vst.msk [vmem:[#allocation2 + $0x28] sm:$0xff] (!%p4773_p10), %vm334_vm0, %v6170_v0 }
  0x19   : > { %s6256_s12 = scalar_lea.vmem %s7364_s0, %s4769_s8  ;;  %s5960_s17 = smul.u32 36, %s7395_s19  ;;  %341 = vst.msk [vmem:[#allocation2 + $0x30] sm:$0xff] (!%p4773_p10), %vm334_vm0, %v6170_v0  ;;  %342 = vst.msk [vmem:[#allocation2 + $0x38] sm:$0xff] (!%p4773_p10), %vm334_vm0, %v6170_v0 }
  0x1a   : > { %s6261_s15 = scalar_lea.vmem %s7365_s1, %s5959_s9  ;;  %333 = sbr.rel (%p4773_p10) target bundleno = 40 (0x28), region = 44  ;;  %343 = vst.msk [vmem:[#allocation2 + $0x40] sm:$0xff] (!%p4773_p10), %vm334_vm0, %v6170_v0  ;;  %344 = vst.msk [vmem:[#allocation2 + $0x48] sm:$0xff] (!%p4773_p10), %vm334_vm0, %v6170_v0 }
  0x1b   : > { %s317_s27 = sadd.s32 %s5961_s16, %s5960_s17  ;;  %345 = vst.msk [vmem:[#allocation2 + $0x50] sm:$0xff] (!%p4773_p10), %vm334_vm0, %v6170_v0  ;;  %346 = vst.msk [vmem:[#allocation2 + $0x58] sm:$0xff] (!%p4773_p10), %vm334_vm0, %v6170_v0 }
  0x1c   : > { %s4771_s28 = sshll.u32 %s317_s27, 3  ;;  %s4772_s26 = sshll.u32 %s317_s27, 2  ;;  %347 = vst.msk [vmem:[#allocation2 + $0x60] sm:$0xff] (!%p4773_p10), %vm334_vm0, %v6170_v0  ;;  %348 = vst.msk [vmem:[#allocation2 + $0x68] sm:$0xff] (!%p4773_p10), %vm334_vm0, %v6170_v0 }
  0x1d   : > { %s6267_s6 = scalar_lea.vmem %s7368_s4, %s4771_s28  ;;  %s6272_s8 = scalar_lea.vmem %s7369_s5, %s4772_s26  ;;  %349 = vst.msk [vmem:[#allocation2 + $0x70] sm:$0xff] (!%p4773_p10), %vm334_vm0, %v6170_v0  ;;  %350 = vst.msk [vmem:[#allocation2 + $0x78] sm:$0xff] (!%p4773_p10), %vm334_vm0, %v6170_v0 }
  0x1e   : > { %351 = vst.msk [vmem:[#allocation2 + $0x80] sm:$0xff] (!%p4773_p10), %vm334_vm0, %v6170_v0  ;;  %352 = vst.msk [vmem:[#allocation2 + $0x88] sm:$0xff] (!%p4773_p10), %vm334_vm0, %v6170_v0 }
  0x1f   : > { %353 = vst.msk [vmem:[#allocation2 + $0x90] sm:$0xff] (!%p4773_p10), %vm334_vm0, %v6170_v0  ;;  %354 = vst.msk [vmem:[#allocation2 + $0x98] sm:$0xff] (!%p4773_p10), %vm334_vm0, %v6170_v0 }
  0x20   : > { %355 = vst.msk [vmem:[#allocation2 + $0xa0] sm:$0xff] (!%p4773_p10), %vm334_vm0, %v6170_v0  ;;  %356 = vst.msk [vmem:[#allocation2 + $0xa8] sm:$0xff] (!%p4773_p10), %vm334_vm0, %v6170_v0 }
  0x21   : > { %357 = vst.msk [vmem:[#allocation2 + $0xb0] sm:$0xff] %vm334_vm0, %v6170_v0  ;;  %358 = vst.msk [vmem:[#allocation2 + $0xb8] sm:$0xff] %vm334_vm0, %v6170_v0 }
  0x22   : > { %359 = vst.msk [vmem:[#allocation2 + $0xc0] sm:$0xff] %vm334_vm0, %v6170_v0  ;;  %360 = vst.msk [vmem:[#allocation2 + $0xc8] sm:$0xff] %vm334_vm0, %v6170_v0 }
  0x23   : > { %361 = vst.msk [vmem:[#allocation2 + $0xd0] sm:$0xff] %vm334_vm0, %v6170_v0  ;;  %362 = vst.msk [vmem:[#allocation2 + $0xd8] sm:$0xff] %vm334_vm0, %v6170_v0 }
  0x24   : > { %363 = vst.msk [vmem:[#allocation2 + $0xe0] sm:$0xff] %vm334_vm0, %v6170_v0  ;;  %364 = vst.msk [vmem:[#allocation2 + $0xe8] sm:$0xff] %vm334_vm0, %v6170_v0 }
  0x25   : > { %365 = vst.msk [vmem:[#allocation2 + $0xf0] sm:$0xff] %vm334_vm0, %v6170_v0  ;;  %366 = vst.msk [vmem:[#allocation2 + $0xf8] sm:$0xff] %vm334_vm0, %v6170_v0 }
  0x26   : > { %367 = vst.msk [vmem:[#allocation2 + $0x100] sm:$0xff] %vm334_vm0, %v6170_v0  ;;  %368 = vst.msk [vmem:[#allocation2 + $0x108] sm:$0xff] %vm334_vm0, %v6170_v0 }
  0x27   : > { %369 = vst.msk [vmem:[#allocation2 + $0x110] sm:$0xff] %vm334_vm0, %v6170_v0  ;;  %370 = vst.msk [vmem:[#allocation2 + $0x118] sm:$0xff] %vm334_vm0, %v6170_v0 }
  0x28 PF: > { %v6020_v1 = vld [vmem:[%s6261_s15 + $0x10] sm:$0xff]   ;;  %v6021_v2 = vld [vmem:[%s6261_s15 + $0x40] sm:$0xff]   ;;  %v6022_v3 = vld [vmem:[%s6261_s15 + $0x18] sm:$0xff]   ;;  %vm671_vm1 = vcmask 261120   ;;  %vm510_vm2 = vsmask.f32 7424 }
  0x29   : > { %5305 = vmatprep.subr.bf16.mxu1 %v6020_v1  ;;  %5465 = vmatprep.subr.bf16.mxu0 %v6021_v2  ;;  %v6023_v4 = vld [vmem:[%s6261_s15 + $0x48] sm:$0xff]   ;;  %v371_v5 = vld [vmem:[%s6256_s12] sm:$0xf]  ;;  %v6317_v6 = vld [vmem:[%s6256_s12 + $0x4] sm:$0xf]  ;;  %vm2373_vm4 = vcmask 1045504  }
  0x2a   : > { %5306 = vmatpush3.bf16.msra.mxu1 %v6020_v1  ;;  %5466 = vmatpush3.bf16.msra.mxu0 %v6021_v2  ;;  %v6320_v7 = vcombine.low %v371_v5, %v6317_v6  ;;  %v6323_v8 = vld [vmem:[%s6256_s12 + $0x8] sm:$0xff]   ;;  %v6326_v9 = vld [vmem:[%s6256_s12 + $0x10] sm:$0xff]   ;;  %vm1914_vm3 = vsmask.f32 6400  ;;  %v6345_v22 = vld [vmem:[%s6256_s12 + $0x18] sm:$0xff]   ;;  %vm1137_vm5 = vcmask 1046528  }
  0x2b   : > { %5307 = vmatprep.subr.bf16.mxu1 %v6022_v3  ;;  %5467 = vmatprep.subr.bf16.mxu0 %v6023_v4  ;;  %v1454_v10 = vld [vmem:[%s6256_s12 + $0x8] sm:$0xe]  ;;  %v6330_v11 = vld [vmem:[%s6256_s12 + $0xc] sm:$0xf]  ;;  %v519_v14 = vshll.u32 %v6323_v8, 16  ;;  %v523_v15 = vshrl.u32 %v6323_v8, 16 }
  0x2c   : > { %v512_v12 = vshrl.u32 %v6320_v7, 16  ;;  %v514_v13 = vshll.u32 %v6320_v7, 16  ;;  %v6337_v16 = vcombine.low %v1454_v10, %v6330_v11  ;;  %v1924_v17 = vshrl.u32 %v6326_v9, 16  ;;  %v6342_v21 = vld [vmem:[%s6256_s12 + $0x10] sm:$0xff]   ;;  %v6356_v41 = vld [vmem:[%s6256_s12 + $0x18] sm:$0xff]   ;;  %v6360_v43 = vld [vmem:[%s6256_s12 + $0x20] sm:$0xff]  }
  0x2d   : > { %v1927_v18 = vshll.u32 %v6326_v9, 16  ;;  %v521_v20 = vrot.slane %v519_v14, 1  ;;  %v527_v29 = vshll.u32 %v6342_v21, 16  ;;  %v1933_v30 = vshrl.u32 %v6345_v22, 16  ;;  %v6030_v35 = vld [vmem:[%s6261_s15 + $0x50] sm:$0xff]   ;;  %v6367_v49 = vld [vmem:[%s6256_s12 + $0x20] sm:$0xff]  }
  0x2e   : > { %5308 = vmatpush3.bf16.msra.mxu1 %v6022_v3  ;;  %5468 = vmatpush3.bf16.msra.mxu0 %v6023_v4  ;;  %v516_v19 = vrot.slane %v514_v13, 1  ;;  %v1916_v23 = vshrl.u32 %v6337_v16, 16  ;;  %v1919_v24 = vshll.u32 %v6337_v16, 16  ;;  %v1926_v25 = vrot.slane %v1924_v17, 1  ;;  %v6034_v53 = vld [vmem:[%s6261_s15] sm:$0xff]   ;;  %v6377_v57 = vld [vmem:[%s6256_s12 + $0x28] sm:$0xff]  }
  0x2f   : > { %v1929_v26 = vrot.slane %v1927_v18, 2  ;;  %v525_v28 = vor.u32 %v523_v15, %v521_v20  ;;  %v1936_v34 = vshll.u32 %v6345_v22, 16  ;;  %v529_v37 = vrot.slane %v527_v29, 1  ;;  %5505 = vmatprep.subr.bf16.mxu0 %v6030_v35  ;;  %v6380_v58 = vld [vmem:[%s6256_s12 + $0x28] sm:$0xff]   ;;  %5345 = vmatprep.subr.bf16.mxu1 %v6034_v53  ;;  %v6390_v5 = vld [vmem:[%s6256_s12 + $0x30] sm:$0xff]   ;;  %v6398_v15 = vld [vmem:[%s6256_s12 + $0x38] sm:$0xff]  }
  0x30   : > { %v517_v27 = vor.u32 %v516_v19, %v512_v12  ;;  %v1918_v31 = vrot.slane %v1916_v23, 1  ;;  %v1921_v32 = vrot.slane %v1919_v24, 2  ;;  %v1935_v38 = vrot.slane %v1933_v30, 1  ;;  %v6394_v13 = vld [vmem:[%s6256_s12 + $0x30] sm:$0xff]   ;;  %p5048_p11 = scmp.ne.s32.totalorder %s6144_s18, 2 }
  0x31   : > { %v1930_v33 = vor.u32 %v1929_v26, %v1926_v25  ;;  %v1938_v40 = vrot.slane %v1936_v34, 2  ;;  %v531_v42 = vshrl.u32 %v6342_v21, 16  ;;  %v530_v44 = vsel %vm510_vm2, %v525_v28, %v529_v37 }
  0x32   : > { %v522_v36 = vsel %vm510_vm2, %v517_v27, %v521_v20  ;;  %v1922_v39 = vor.u32 %v1921_v32, %v1918_v31  ;;  %v535_v48 = vshll.u32 %v6356_v41, 16  ;;  %v1942_v50 = vshrl.u32 %v6360_v43, 16  ;;  %v6040_v31 = vld [vmem:[%s6261_s15 + $0x58] sm:$0xff]  }
  0x33   : > { %5309 = vmatprep.mubr.msk.bf16.mxu1 %vm671_vm1, %v522_v36  ;;  %v1939_v46 = vor.u32 %v1938_v40, %v1935_v38  ;;  %v533_v47 = vor.u32 %v531_v42, %v529_v37  ;;  %v1945_v51 = vshll.u32 %v6360_v43, 16  ;;  %v539_v52 = vshrl.u32 %v6356_v41, 16  ;;  %v6413_v38 = vld [vmem:[%s6256_s12 + $0x38] sm:$0xff]   ;;  %v6417_v40 = vld [vmem:[%s6256_s12 + $0x40] sm:$0xff]  }
  0x34   : > { %v1931_v45 = vsel %vm1914_vm3, %v1922_v39, %v1930_v33  ;;  %5310 = vmatmul.mubr.msk.bf16.vlgmr.msra.gmra.mrb[0].mxu1 %vm671_vm1, %v530_v44  ;;  %v537_v55 = vrot.slane %v535_v48, 1  ;;  %v543_v56 = vshll.u32 %v6367_v49, 16  ;;  %v1944_v59 = vrot.slane %v1942_v50, 1  ;;  %v6424_v50 = vld [vmem:[%s6256_s12 + $0x40] sm:$0xff]  }
  0x35   : > { %5469 = vmatprep.mubr.msk.bf16.mxu0 %vm671_vm1, %v1931_v45  ;;  %v1940_v54 = vsel %vm1914_vm3, %v1930_v33, %v1939_v46  ;;  %v1947_v60 = vrot.slane %v1945_v51, 2  ;;  %v1951_v0 = vshrl.u32 %v6377_v57, 16  ;;  %5346 = vmatpush3.bf16.msra.mxu1 %v6034_v53  ;;  %v1954_v2 = vshll.u32 %v6377_v57, 16  ;;  %v6427_v51 = vld [vmem:[%s6256_s12 + $0x48] sm:$0xff]  }
  0x36   : > { %5470 = vmatmul.mubr.msk.bf16.vlgmr.msra.gmra.mrb[0].mxu0 %vm671_vm1, %v1940_v54  ;;  %v538_v61 = vsel %vm510_vm2, %v533_v47, %v537_v55  ;;  %v541_v62 = vor.u32 %v539_v52, %v537_v55  ;;  %v545_v63 = vrot.slane %v543_v56, 1  ;;  %v547_v3 = vshrl.u32 %v6367_v49, 16 }
  0x37   : > { %5506 = vmatpush3.bf16.msra.mxu0 %v6030_v35  ;;  %5313 = vmatprep.mubr.msk.bf16.mxu1 %vm671_vm1, %v538_v61  ;;  %v1948_v1 = vor.u32 %v1947_v60, %v1944_v59  ;;  %v551_v4 = vshll.u32 %v6380_v58, 16  ;;  %v1953_v12 = vrot.slane %v1951_v0, 1  ;;  %v555_v14 = vshrl.u32 %v6380_v58, 16  ;;  %v6436_v61 = vld [vmem:[%s6256_s12 + $0x48] sm:$0xff]  }
  0x38   : > { %v546_v10 = vsel %vm510_vm2, %v541_v62, %v545_v63  ;;  %v1956_v18 = vrot.slane %v1954_v2, 2  ;;  %v549_v19 = vor.u32 %v547_v3, %v545_v63  ;;  %v1960_v23 = vshrl.u32 %v6390_v5, 16  ;;  %5507 = vmatprep.subr.bf16.mxu0 %v6040_v31 }
  0x39   : > { %v1949_v17 = vsel %vm1914_vm3, %v1939_v46, %v1948_v1  ;;  %v553_v20 = vrot.slane %v551_v4, 1  ;;  %v1963_v24 = vshll.u32 %v6390_v5, 16  ;;  %v559_v25 = vshll.u32 %v6394_v13, 16 }
  0x3a   : > { %5473 = vmatprep.mubr.msk.bf16.mxu0 %vm671_vm1, %v1949_v17  ;;  %v1969_v26 = vshrl.u32 %v6398_v15, 16  ;;  %v1957_v27 = vor.u32 %v1956_v18, %v1953_v12  ;;  %v1972_v30 = vshll.u32 %v6398_v15, 16  ;;  %v1962_v32 = vrot.slane %v1960_v23, 1  ;;  %v6445_v12 = vld [vmem:[%s6256_s12 + $0x50] sm:$0xff]  }
  0x3b   : > { %v554_v28 = vsel %vm510_vm2, %v549_v19, %v553_v20  ;;  %v557_v29 = vor.u32 %v555_v14, %v553_v20  ;;  %v1965_v33 = vrot.slane %v1963_v24, 2  ;;  %v561_v34 = vrot.slane %v559_v25, 1  ;;  %5508 = vmatpush3.bf16.msra.mxu0 %v6040_v31  ;;  %v6448_v14 = vld [vmem:[%s6256_s12 + $0x50] sm:$0xff]  }
  0x3c   : > { %5314 = vmatmul.mubr.msk.bf16.gmra.mrb[4].mxu1 %vm671_vm1, %v546_v10  ;;  %v1971_v35 = vrot.slane %v1969_v26, 1  ;;  %v1958_v36 = vsel %vm1914_vm3, %v1948_v1, %v1957_v27  ;;  %v1974_v37 = vrot.slane %v1972_v30, 2  ;;  %v563_v39 = vshrl.u32 %v6394_v13, 16  ;;  %v6460_v30 = vld [vmem:[%s6256_s12 + $0x58] sm:$0xff]  }
  0x3d   : > { %5317 = vmatprep.mubr.msk.bf16.mxu1 %vm671_vm1, %v554_v28  ;;  %v1966_v42 = vor.u32 %v1965_v33, %v1962_v32  ;;  %v562_v44 = vsel %vm510_vm2, %v557_v29, %v561_v34  ;;  %v567_v47 = vshll.u32 %v6413_v38, 16  ;;  %v1978_v48 = vshrl.u32 %v6417_v40, 16  ;;  %v6457_v29 = vld [vmem:[%s6256_s12 + $0x58] sm:$0xff]  }
  0x3e   : > { %5474 = vmatmul.mubr.msk.bf16.gmra.mrb[4].mxu0 %vm671_vm1, %v1958_v36  ;;  %v1975_v45 = vor.u32 %v1974_v37, %v1971_v35  ;;  %v565_v46 = vor.u32 %v563_v39, %v561_v34  ;;  %v1981_v53 = vshll.u32 %v6417_v40, 16  ;;  %v571_v54 = vshrl.u32 %v6413_v38, 16  ;;  %v2364_v39 = vld [vmem:[%s6256_s12 + $0x8] sm:$0xc] }
  0x3f   : > { %v1967_v52 = vsel %vm1914_vm3, %v1957_v27, %v1966_v42  ;;  %v569_v56 = vrot.slane %v567_v47, 1  ;;  %v1980_v59 = vrot.slane %v1978_v48, 1  ;;  %v575_v60 = vshll.u32 %v6424_v50, 16 }
  0x40   : > { %5477 = vmatprep.mubr.msk.bf16.mxu0 %vm671_vm1, %v1967_v52  ;;  %v1976_v55 = vsel %vm1914_vm3, %v1966_v42, %v1975_v45  ;;  %v1983_v62 = vrot.slane %v1981_v53, 2  ;;  %v1987_v63 = vshrl.u32 %v6427_v51, 16  ;;  %v1990_v0 = vshll.u32 %v6427_v51, 16  ;;  %v6477_v52 = vld [vmem:[%s6256_s12 + $0x60] sm:$0xff]   ;;  %v6053_v53 = vld [vmem:[%s6261_s15 + $0x8] sm:$0xff]  }
  0x41   : > { %v579_v1 = vshrl.u32 %v6424_v50, 16  ;;  %v570_v2 = vsel %vm510_vm2, %v565_v46, %v569_v56  ;;  %v573_v3 = vor.u32 %v571_v54, %v569_v56  ;;  %v577_v4 = vrot.slane %v575_v60, 1  ;;  %5347 = vmatprep.subr.bf16.mxu1 %v6053_v53 }
  0x42   : > { %v583_v10 = vshll.u32 %v6436_v61, 16  ;;  %v1984_v17 = vor.u32 %v1983_v62, %v1980_v59  ;;  %v1989_v18 = vrot.slane %v1987_v63, 1  ;;  %v1992_v19 = vrot.slane %v1990_v0, 2  ;;  %v6485_v0 = vld [vmem:[%s6256_s12 + $0x68] sm:$0xff]   ;;  %5348 = vmatpush3.bf16.msra.mxu1 %v6053_v53 }
  0x43   : > { %v581_v20 = vor.u32 %v579_v1, %v577_v4  ;;  %v1996_v24 = vshrl.u32 %v6445_v12, 16  ;;  %v578_v26 = vsel %vm510_vm2, %v573_v3, %v577_v4  ;;  %v1999_v28 = vshll.u32 %v6445_v12, 16 }
  0x44   : > { %5318 = vmatmul.mubr.msk.bf16.gmra.mrb[8].mxu1 %vm671_vm1, %v562_v44  ;;  %v585_v23 = vrot.slane %v583_v10, 1  ;;  %v1985_v25 = vsel %vm1914_vm3, %v1975_v45, %v1984_v17  ;;  %v1993_v27 = vor.u32 %v1992_v19, %v1989_v18  ;;  %v587_v32 = vshrl.u32 %v6436_v61, 16  ;;  %v6472_v45 = vld [vmem:[%s6261_s15 + $0x60] sm:$0xff]  }
  0x45   : > { %5321 = vmatprep.mubr.msk.bf16.mxu1 %vm671_vm1, %v570_v2  ;;  %v1998_v31 = vrot.slane %v1996_v24, 1  ;;  %v591_v33 = vshll.u32 %v6448_v14, 16  ;;  %v595_v34 = vshrl.u32 %v6448_v14, 16  ;;  %v2001_v36 = vrot.slane %v1999_v28, 2  ;;  %5545 = vmatprep.subr.bf16.mxu0 %v6472_v45  ;;  %v6507_v28 = vld [vmem:[%s6256_s12 + $0x78] sm:$0xff]  }
  0x46   : > { %5478 = vmatmul.mubr.msk.bf16.gmra.mrb[8].mxu0 %vm671_vm1, %v1976_v55  ;;  %v586_v35 = vsel %vm510_vm2, %v581_v20, %v585_v23  ;;  %v2005_v37 = vshrl.u32 %v6457_v29, 16  ;;  %v2008_v42 = vshll.u32 %v6457_v29, 16  ;;  %v599_v44 = vshll.u32 %v6460_v30, 16  ;;  %v6500_v20 = vld [vmem:[%s6256_s12 + $0x70] sm:$0xff]  }
  0x47   : > { %5481 = vmatprep.mubr.msk.bf16.mxu0 %vm671_vm1, %v1985_v25  ;;  %v1994_v46 = vsel %vm1914_vm3, %v1984_v17, %v1993_v27  ;;  %v2002_v47 = vor.u32 %v2001_v36, %v1998_v31  ;;  %v593_v48 = vrot.slane %v591_v33, 1  ;;  %v589_v54 = vor.u32 %v587_v32, %v585_v23  ;;  %v6512_v32 = vld [vmem:[%s6261_s15 + $0x20] sm:$0xff]  }
  0x48   : > { %v2007_v55 = vrot.slane %v2005_v37, 1  ;;  %v2010_v56 = vrot.slane %v2008_v42, 2  ;;  %v4934_v59 = vcombine.low %v2364_v39, %v6330_v11  ;;  %v601_v63 = vrot.slane %v599_v44, 1  ;;  %5385 = vmatprep.subr.bf16.mxu1 %v6512_v32 }
  0x49   : > { %v2003_v60 = vsel %vm1914_vm3, %v1993_v27, %v2002_v47  ;;  %v597_v62 = vor.u32 %v595_v34, %v593_v48  ;;  %v2375_v1 = vrot.slane %v6326_v9, 2  ;;  %v607_v2 = vshll.u32 %v6477_v52, 16 }
  0x4a   : > { %v594_v11 = vsel %vm510_vm2, %v589_v54, %v593_v48  ;;  %v6492_v3 = vor.u32 %v2010_v56, %v2007_v55  ;;  %v2374_v4 = vrot.slane %v4934_v59, 2  ;;  %v603_v10 = vshrl.u32 %v6460_v30, 16  ;;  %v6530_v48 = vld [vmem:[%s6256_s12 + $0x88] sm:$0xff]  }
  0x4b   : > { %v602_v17 = vsel %vm510_vm2, %v597_v62, %v601_v63  ;;  %v611_v18 = vshrl.u32 %v6477_v52, 16  ;;  %v615_v19 = vshll.u32 %v6485_v0, 16  ;;  %v609_v9 = vrot.slane %v607_v2, 1  ;;  %v6060_v55 = vld [vmem:[%s6261_s15 + $0x68] sm:$0xff]  }
  0x4c   : > { %5322 = vmatmul.mubr.msk.bf16.gmra.mrb[12].mxu1 %vm671_vm1, %v578_v26  ;;  %v2012_v23 = vsel %vm1914_vm3, %v2002_v47, %v6492_v3  ;;  %v605_v24 = vor.u32 %v603_v10, %v601_v63  ;;  %v2376_v25 = vsel %vm2373_vm4, %v2374_v4, %v2375_v1  ;;  %v623_v31 = vshll.u32 %v6500_v20, 16  ;;  %v6546_v4 = vld [vmem:[%s6256_s12 + $0x90] ss:$0 sps:$4 sm:$0x11]  }
  0x4d   : > { %5325 = vmatprep.mubr.msk.bf16.mxu1 %vm671_vm1, %v586_v35  ;;  %v613_v26 = vor.u32 %v611_v18, %v609_v9  ;;  %v617_v27 = vrot.slane %v615_v19, 1  ;;  %v2377_v34 = vrot.slane %v6345_v22, 2  ;;  %v619_v35 = vshrl.u32 %v6485_v0, 16 }
  0x4e   : > { %5482 = vmatmul.mubr.msk.bf16.gmra.mrb[12].mxu0 %vm671_vm1, %v1994_v46  ;;  %v610_v33 = vsel %vm510_vm2, %v605_v24, %v609_v9  ;;  %v2379_v37 = vrot.slane %v6360_v43, 2  ;;  %v627_v39 = vshrl.u32 %v6500_v20, 16  ;;  %v631_v42 = vshll.u32 %v6507_v28, 16  ;;  %v6525_v46 = vld [vmem:[%s6256_s12 + $0x80] sm:$0xff]  }
  0x4f   : > { %5485 = vmatprep.mubr.msk.bf16.mxu0 %vm671_vm1, %v2003_v60  ;;  %v618_v36 = vsel %vm510_vm2, %v613_v26, %v617_v27  ;;  %v625_v44 = vrot.slane %v623_v31, 1  ;;  %v2378_v22 = vsel %vm2373_vm4, %v2375_v1, %v2377_v34  ;;  %v621_v47 = vor.u32 %v619_v35, %v617_v27 }
  0x50   : > { %v2380_v43 = vsel %vm2373_vm4, %v2377_v34, %v2379_v37  ;;  %v633_v54 = vrot.slane %v631_v42, 1  ;;  %v639_v56 = vshll.u32 %v6525_v46, 16  ;;  %v2381_v60 = vrot.slane %v6377_v57, 2  ;;  %v6579_v42 = vld [vmem:[%s6256_s12 + $0x60] sm:$0xff]  }
  0x51   : > { %v629_v53 = vor.u32 %v627_v39, %v625_v44  ;;  %v626_v59 = vsel %vm510_vm2, %v621_v47, %v625_v44  ;;  %v635_v62 = vshrl.u32 %v6507_v28, 16  ;;  %v2383_v1 = vrot.slane %v6390_v5, 2  ;;  %v6074_v44 = vld [vmem:[%s6261_s15 + $0x28] sm:$0xff]  }
  0x52   : > { %v643_v2 = vshrl.u32 %v6525_v46, 16  ;;  %v2382_v10 = vsel %vm2373_vm4, %v2379_v37, %v2381_v60  ;;  %v2385_v9 = vrot.slane %v6398_v15, 2  ;;  %v651_v24 = vshrl.u32 %v6530_v48, 16 }
  0x53   : > { %v634_v63 = vsel %vm510_vm2, %v629_v53, %v633_v54  ;;  %v637_v57 = vor.u32 %v635_v62, %v633_v54  ;;  %v2384_v5 = vsel %vm2373_vm4, %v2381_v60, %v2383_v1  ;;  %v2387_v27 = vrot.slane %v6417_v40, 2 }
  0x54   : > { %5326 = vmatmul.mubr.msk.bf16.gmra.mrb[16].mxu1 %vm671_vm1, %v594_v11  ;;  %v647_v11 = vshll.u32 %v6530_v48, 16  ;;  %v2386_v31 = vsel %vm2373_vm4, %v2383_v1, %v2385_v9  ;;  %v2389_v40 = vrot.slane %v6427_v51, 2  ;;  %v2393_v51 = vrot.slane %v6457_v29, 2  ;;  %v6597_v29 = vld [vmem:[%s6256_s12 + $0x70] sm:$0xff]   ;;  %v6629_v1 = vld [vmem:[%s6256_s12 + $0x88] sm:$0xff]  }
  0x55   : > { %5329 = vmatprep.mubr.msk.bf16.mxu1 %vm671_vm1, %v602_v17  ;;  %v6552_v17 = vld [vmem:[%s6261_s15 + $0x70] sm:$0xff]   ;;  %v2388_v34 = vsel %vm2373_vm4, %v2385_v9, %v2387_v27  ;;  %v2399_v54 = vrot.slane %v6597_v29, 2  ;;  %vm3150_vm6 = vsmask.f32 5376  ;;  %vm3609_vm7 = vcmask 1044480  }
  0x56   : > { %5486 = vmatmul.mubr.msk.bf16.gmra.mrb[16].mxu0 %vm671_vm1, %v2012_v23  ;;  %v649_v19 = vrot.slane %v647_v11, 1  ;;  %v2390_v37 = vsel %vm2373_vm4, %v2387_v27, %v2389_v40  ;;  %v6633_v11 = vld [vmem:[%s6256_s12 + $0x90] sm:$0xff]   ;;  %vm3998_vm8 = vcmask 130048   ;;  %vm4593_vm9 = vcmask (!%p5048_p11), 125952  }
  0x57   : > { %5509 = vmatprep.mubr.msk.bf16.mxu0 %vm671_vm1, %v2376_v25  ;;  %v655_v25 = vshll.u32 %v6546_v4, 16 }
  0x58   : > { %v653_v15 = vor.u32 %v651_v24, %v649_v19  ;;  %v6656_v24 = vld [vmem:[%s6256_s12 + $0x18] sm:$0xff]  }
  0x59   : > { %v2826_v27 = vrot.slane %v6656_v24, 2 }
  0x5c   : > { %5330 = vmatmul.mubr.msk.bf16.gmra.mrb[20].mxu1 %vm671_vm1, %v610_v33  ;;  %v657_v33 = vrot.slane %v655_v25, 1 }
  0x5d   : > { %5333 = vmatprep.mubr.msk.bf16.mxu1 %vm671_vm1, %v618_v36  ;;  %v2391_v36 = vrot.slane %v6445_v12, 2  ;;  %v2395_v12 = vrot.slane %v6579_v42, 2 }
  0x5e   : > { %5510 = vmatmul.mubr.msk.bf16.vlgmr.msra.gmra.mrb[0].mxu0 %vm671_vm1, %v2378_v22  ;;  %v658_v35 = vsel %vm510_vm2, %v653_v15, %v657_v33  ;;  %v6669_v15 = vld [vmem:[%s6256_s12 + $0x20] sm:$0xff]  }
  0x5f   : > { %5546 = vmatpush3.bf16.msra.mxu0 %v6472_v45  ;;  %5513 = vmatprep.mubr.msk.bf16.mxu0 %vm671_vm1, %v2380_v43  ;;  %v641_v45 = vrot.slane %v639_v56, 1  ;;  %v2392_v39 = vsel %vm2373_vm4, %v2389_v40, %v2391_v36  ;;  %v2394_v22 = vsel %vm2373_vm4, %v2391_v36, %v2393_v51  ;;  %v2396_v47 = vsel %vm2373_vm4, %v2393_v51, %v2395_v12  ;;  %v6600_v43 = vld [vmem:[%s6261_s15 + $0x30] sm:$0xff]   ;;  %v6689_v51 = vld [vmem:[%s6256_s12 + $0x38] sm:$0xff]  }
  0x60   : > { %5547 = vmatprep.subr.bf16.mxu0 %v6060_v55 }
  0x61   : > { %v645_v18 = vor.u32 %v643_v2, %v641_v45  ;;  %v642_v23 = vsel %vm510_vm2, %v637_v57, %v641_v45  ;;  %v2405_v45 = vrot.slane %v6629_v1, 2  ;;  %v2690_v57 = vld [vmem:[%s6256_s12 + $0x10] sm:$0xc] }
  0x63   : > { %5548 = vmatpush3.bf16.msra.mxu0 %v6060_v55  ;;  %v650_v26 = vsel %vm510_vm2, %v645_v18, %v649_v19  ;;  %v6613_v55 = vld [vmem:[%s6256_s12 + $0x78] sm:$0xff]  }
  0x64   : > { %5334 = vmatmul.mubr.msk.bf16.gmra.mrb[24].mxu1 %vm671_vm1, %v626_v59  ;;  %5585 = vmatprep.subr.bf16.mxu0 %v6552_v17  ;;  %v6617_v59 = vld [vmem:[%s6256_s12 + $0x80] sm:$0xff]   ;;  %v2401_v60 = vrot.slane %v6613_v55, 2  ;;  %v6649_v19 = vld [vmem:[%s6256_s12 + $0x98] ss:$0 sps:$4 sm:$0x33]  }
  0x65   : > { %5337 = vmatprep.mubr.msk.bf16.mxu1 %vm671_vm1, %v634_v63  ;;  %v2403_v62 = vrot.slane %v6617_v59, 2  ;;  %v2409_v25 = vrot.slane %v6649_v19, 2 }
  0x66   : > { %5514 = vmatmul.mubr.msk.bf16.gmra.mrb[4].mxu0 %vm671_vm1, %v2382_v10  ;;  %v2402_v63 = vsel %vm2373_vm4, %v2399_v54, %v2401_v60  ;;  %v2407_v10 = vrot.slane %v6633_v11, 2 }
  0x67   : > { %5517 = vmatprep.mubr.msk.bf16.mxu0 %vm671_vm1, %v2384_v5  ;;  %v2404_v2 = vsel %vm2373_vm4, %v2401_v60, %v2403_v62  ;;  %v6641_v5 = vld [vmem:[%s6256_s12 + $0x14] sm:$0xf]  ;;  %v2406_v18 = vsel %vm2373_vm4, %v2403_v62, %v2405_v45 }
  0x68   : > { %v2408_v9 = vsel %vm2373_vm4, %v2405_v45, %v2407_v10  ;;  %v6725_v45 = vld [vmem:[%s6256_s12 + $0x50] sm:$0xff]  }
  0x6c   : > { %5338 = vmatmul.mubr.msk.bf16.gmra.mrb[28].mxu1 %vm671_vm1, %v642_v23  ;;  %v6653_v23 = vcombine.low %v2690_v57, %v6641_v5 }
  0x6d   : > { %5341 = vmatprep.mubr.msk.bf16.mxu1 %vm671_vm1, %v650_v26 }
  0x6e   : > { %5518 = vmatmul.mubr.msk.bf16.gmra.mrb[8].mxu0 %vm671_vm1, %v2386_v31  ;;  %v2825_v26 = vrot.slane %v6653_v23, 2  ;;  %v2410_v31 = vsel %vm2373_vm4, %v2407_v10, %v2409_v25 }
  0x6f   : > { %5521 = vmatprep.mubr.msk.bf16.mxu0 %vm671_vm1, %v2388_v34  ;;  %v6673_v34 = vld [vmem:[%s6256_s12 + $0x28] sm:$0xff]  }
  0x70   : > { %v2827_v33 = vsel %vm2373_vm4, %v2825_v26, %v2826_v27  ;;  %v2830_v40 = vrot.slane %v6673_v34, 2 }
  0x74   : > { %5342 = vmatmul.mubr.msk.bf16.gmra.mrb[32].mxu1 %vm671_vm1, %v658_v35  ;;  %v2828_v35 = vrot.slane %v6669_v15, 2 }
  0x75   : > { %5349 = vmatprep.mubr.msk.bf16.mxu1 %vm671_vm1, %v6320_v7  ;;  %v6592_v7 = vld [vmem:[%s6256_s12 + $0x68] sm:$0xff]  }
  0x76   : > { %5522 = vmatmul.mubr.msk.bf16.gmra.mrb[12].mxu0 %vm671_vm1, %v2390_v37  ;;  %v2397_v53 = vrot.slane %v6592_v7, 2  ;;  %v2829_v36 = vsel %vm2373_vm4, %v2826_v27, %v2828_v35  ;;  %v6685_v37 = vld [vmem:[%s6256_s12 + $0x30] sm:$0xff]  }
  0x77   : > { %5525 = vmatprep.mubr.msk.bf16.mxu0 %vm671_vm1, %v2392_v39  ;;  %v2831_v39 = vsel %vm2373_vm4, %v2828_v35, %v2830_v40  ;;  %v1143_v35 = vrot.slane %v6356_v41, 1 }
  0x78   : > { %v2400_v56 = vsel %vm2373_vm4, %v2397_v53, %v2399_v54  ;;  %v6706_v54 = vld [vmem:[%s6256_s12 + $0x40] sm:$0xff]  }
  0x79   : > { %v2836_v60 = vrot.slane %v6706_v54, 2 }
  0x7c   : > { %5350 = vmatmul.mubr.msk.bf16.vlgmr.msra.gmra.mrb[0].mxu1 %vm671_vm1, %v6323_v8 }
  0x7d   : > { %5353 = vmatprep.mubr.msk.bf16.mxu1 %vm671_vm1, %v6342_v21  ;;  %5386 = vmatpush3.bf16.msra.mxu1 %v6512_v32  ;;  %v2398_v32 = vsel %vm2373_vm4, %v2395_v12, %v2397_v53  ;;  %v6084_v12 = vld [vmem:[%s6261_s15 + $0x78] sm:$0xff]  }
  0x7e   : > { %5387 = vmatprep.subr.bf16.mxu1 %v6074_v44  ;;  %5526 = vmatmul.mubr.msk.bf16.gmra.mrb[16].mxu0 %vm671_vm1, %v2394_v22  ;;  %v2834_v22 = vrot.slane %v6689_v51, 2 }
  0x7f   : > { %5529 = vmatprep.mubr.msk.bf16.mxu0 %vm671_vm1, %v2396_v47  ;;  %v6698_v47 = vld [vmem:[%s6261_s15 + $0x80] sm:$0xff]  }
  0x81   : > { %5388 = vmatpush3.bf16.msra.mxu1 %v6074_v44  ;;  %v2832_v44 = vrot.slane %v6685_v37, 2 }
  0x82   : > { %5425 = vmatprep.subr.bf16.mxu1 %v6600_v43 }
  0x83   : > { %v2833_v53 = vsel %vm2373_vm4, %v2830_v40, %v2832_v44  ;;  %v6748_v40 = vld [vmem:[%s6256_s12 + $0x68] sm:$0xff]  }
  0x84   : > { %5354 = vmatmul.mubr.msk.bf16.gmra.mrb[4].mxu1 %vm671_vm1, %v6356_v41 }
  0x85   : > { %5357 = vmatprep.mubr.msk.bf16.mxu1 %vm671_vm1, %v6367_v49 }
  0x86   : > { %5530 = vmatmul.mubr.msk.bf16.gmra.mrb[20].mxu0 %vm671_vm1, %v2398_v32  ;;  %v6710_v32 = vld [vmem:[%s6256_s12 + $0x48] sm:$0xff]  }
  0x87   : > { %5533 = vmatprep.mubr.msk.bf16.mxu0 %vm671_vm1, %v2400_v56  ;;  %v1128_v56 = vld [vmem:[%s6256_s12] sm:$0xe]  ;;  %v2838_v62 = vrot.slane %v6710_v32, 2 }
  0x89   : > { %v2839_v10 = vsel %vm2373_vm4, %v2836_v60, %v2838_v62 }
  0x8c   : > { %5358 = vmatmul.mubr.msk.bf16.gmra.mrb[8].mxu1 %vm671_vm1, %v6380_v58 }
  0x8d   : > { %5361 = vmatprep.mubr.msk.bf16.mxu1 %vm671_vm1, %v6394_v13 }
  0x8e   : > { %5534 = vmatmul.mubr.msk.bf16.gmra.mrb[24].mxu0 %vm671_vm1, %v2402_v63  ;;  %v4841_v63 = vcombine.low %v1128_v56, %v6317_v6  ;;  %v2840_v6 = vrot.slane %v6725_v45, 2  ;;  %v1147_v56 = vrot.slane %v6380_v58, 1 }
  0x8f   : > { %5537 = vmatprep.mubr.msk.bf16.mxu0 %vm671_vm1, %v2404_v2  ;;  %v2837_v2 = vsel %vm2373_vm4, %v2834_v22, %v2836_v60  ;;  %v6768_v60 = vld [vmem:[%s6256_s12 + $0x78] sm:$0xff]  }
  0x90   : > { %v1138_v57 = vrot.slane %v4841_v63, 1  ;;  %v2841_v27 = vsel %vm2373_vm4, %v2838_v62, %v2840_v6  ;;  %v2850_v63 = vrot.slane %v6768_v60, 2 }
  0x94   : > { %5362 = vmatmul.mubr.msk.bf16.gmra.mrb[12].mxu1 %vm671_vm1, %v6413_v38 }
  0x95   : > { %5365 = vmatprep.mubr.msk.bf16.mxu1 %vm671_vm1, %v6424_v50 }
  0x96   : > { %5538 = vmatmul.mubr.msk.bf16.gmra.mrb[28].mxu0 %vm671_vm1, %v2406_v18  ;;  %v1139_v18 = vrot.slane %v6323_v8, 1  ;;  %v1141_v8 = vrot.slane %v6342_v21, 1 }
  0x97   : > { %5541 = vmatprep.mubr.msk.bf16.mxu0 %vm671_vm1, %v2408_v9  ;;  %v6730_v9 = vld [vmem:[%s6256_s12 + $0x58] sm:$0xff]  }
  0x98   : > { %v1140_v25 = vsel %vm1137_vm5, %v1138_v57, %v1139_v18  ;;  %v2842_v26 = vrot.slane %v6730_v9, 2  ;;  %v1144_v21 = vsel %vm1137_vm5, %v1141_v8, %v1143_v35  ;;  %v6785_v57 = vld [vmem:[%s6256_s12 + $0x80] sm:$0xff]  }
  0x9c   : > { %5366 = vmatmul.mubr.msk.bf16.gmra.mrb[16].mxu1 %vm671_vm1, %v6436_v61 }
  0x9d   : > { %5369 = vmatprep.mubr.msk.bf16.mxu1 %vm671_vm1, %v6448_v14 }
  0x9e   : > { %5542 = vmatmul.mubr.msk.bf16.gmra.mrb[32].mxu0 %vm671_vm1, %v2410_v31  ;;  %v6743_v31 = vld [vmem:[%s6256_s12 + $0x60] sm:$0xff]  }
  0x9f   : > { %5549 = vmatprep.mubr.msk.bf16.mxu0 %vm671_vm1, %v2827_v33  ;;  %v2843_v33 = vsel %vm2373_vm4, %v2840_v6, %v2842_v26  ;;  %v1151_v6 = vrot.slane %v6413_v38, 1  ;;  %v1153_v38 = vrot.slane %v6424_v50, 1  ;;  %v3152_v50 = vshrl.u32 %v6653_v23, 16 }
  0xa4   : > { %5370 = vmatmul.mubr.msk.bf16.gmra.mrb[20].mxu1 %vm671_vm1, %v6460_v30 }
  0xa5   : > { %5373 = vmatprep.mubr.msk.bf16.mxu1 %vm671_vm1, %v6477_v52 }
  0xa6   : > { %5550 = vmatmul.mubr.msk.bf16.vlgmr.msra.gmra.mrb[0].mxu0 %vm671_vm1, %v2829_v36  ;;  %v1142_v36 = vsel %vm1137_vm5, %v1139_v18, %v1141_v8 }
  0xa7   : > { %5586 = vmatpush3.bf16.msra.mxu0 %v6552_v17  ;;  %5553 = vmatprep.mubr.msk.bf16.mxu0 %vm671_vm1, %v2831_v39  ;;  %v2835_v17 = vsel %vm2373_vm4, %v2832_v44, %v2834_v22  ;;  %v2844_v39 = vrot.slane %v6743_v31, 2  ;;  %v6095_v44 = vld [vmem:[%s6261_s15 + $0x38] sm:$0xff]   ;;  %v1145_v22 = vrot.slane %v6367_v49, 1 }
  0xa8   : > { %5587 = vmatprep.subr.bf16.mxu0 %v6084_v12 }
  0xa9   : > { %v2845_v41 = vsel %vm2373_vm4, %v2842_v26, %v2844_v39  ;;  %v1146_v62 = vsel %vm1137_vm5, %v1143_v35, %v1145_v22  ;;  %v6803_v35 = vld [vmem:[%s6256_s12 + $0x90] sm:$0xff]  }
  0xab   : > { %5588 = vmatpush3.bf16.msra.mxu0 %v6084_v12  ;;  %v2846_v12 = vrot.slane %v6748_v40, 2 }
  0xac   : > { %5374 = vmatmul.mubr.msk.bf16.gmra.mrb[24].mxu1 %vm671_vm1, %v6485_v0  ;;  %5625 = vmatprep.subr.bf16.mxu0 %v6698_v47 }
  0xad   : > { %5377 = vmatprep.mubr.msk.bf16.mxu1 %vm671_vm1, %v6500_v20 }
  0xae   : > { %5554 = vmatmul.mubr.msk.bf16.gmra.mrb[4].mxu0 %vm671_vm1, %v2833_v53  ;;  %v6762_v53 = vld [vmem:[%s6256_s12 + $0x70] sm:$0xff]  }
  0xaf   : > { %5557 = vmatprep.mubr.msk.bf16.mxu0 %vm671_vm1, %v2835_v17  ;;  %v2847_v17 = vsel %vm2373_vm4, %v2844_v39, %v2846_v12  ;;  %v2848_v49 = vrot.slane %v6762_v53, 2 }
  0xb1   : > { %v2849_v58 = vsel %vm2373_vm4, %v2846_v12, %v2848_v49  ;;  %v2851_v18 = vsel %vm2373_vm4, %v2848_v49, %v2850_v63  ;;  %v1154_v12 = vsel %vm1137_vm5, %v1151_v6, %v1153_v38 }
  0xb4   : > { %5378 = vmatmul.mubr.msk.bf16.gmra.mrb[28].mxu1 %vm671_vm1, %v6507_v28 }
  0xb5   : > { %5381 = vmatprep.mubr.msk.bf16.mxu1 %vm671_vm1, %v6525_v46 }
  0xb6   : > { %5558 = vmatmul.mubr.msk.bf16.gmra.mrb[8].mxu0 %vm671_vm1, %v2837_v2  ;;  %v6777_v2 = vld [vmem:[%s6261_s15 + $0x40] sm:$0xff]  }
  0xb7   : > { %5561 = vmatprep.mubr.msk.bf16.mxu0 %vm671_vm1, %v2839_v10  ;;  %v1149_v10 = vrot.slane %v6394_v13, 1 }
  0xb9   : > { %v1150_v26 = vsel %vm1137_vm5, %v1147_v56, %v1149_v10  ;;  %v1152_v8 = vsel %vm1137_vm5, %v1149_v10, %v1151_v6 }
  0xbc   : > { %5382 = vmatmul.mubr.msk.bf16.gmra.mrb[32].mxu1 %vm671_vm1, %v6530_v48 }
  0xbd   : > { %5389 = vmatprep.mubr.msk.bf16.mxu1 %vm671_vm1, %v1140_v25  ;;  %v6790_v25 = vld [vmem:[%s6256_s12 + $0x88] sm:$0xff]  }
  0xbe   : > { %5562 = vmatmul.mubr.msk.bf16.gmra.mrb[12].mxu0 %vm671_vm1, %v2841_v27  ;;  %v2852_v27 = vrot.slane %v6785_v57, 2  ;;  %v2854_v13 = vrot.slane %v6790_v25, 2 }
  0xbf   : > { %5565 = vmatprep.mubr.msk.bf16.mxu0 %vm671_vm1, %v2843_v33 }
  0xc0   : > { %v2853_v33 = vsel %vm2373_vm4, %v2850_v63, %v2852_v27  ;;  %v2855_v39 = vsel %vm2373_vm4, %v2852_v27, %v2854_v13  ;;  %v1159_v63 = vrot.slane %v6460_v30, 1 }
  0xc4   : > { %5390 = vmatmul.mubr.msk.bf16.vlgmr.msra.gmra.mrb[0].mxu1 %vm671_vm1, %v1142_v36  ;;  %v1155_v36 = vrot.slane %v6436_v61, 1  ;;  %v3155_v61 = vshll.u32 %v6653_v23, 16 }
  0xc5   : > { %5393 = vmatprep.mubr.msk.bf16.mxu1 %vm671_vm1, %v1144_v21  ;;  %5426 = vmatpush3.bf16.msra.mxu1 %v6600_v43  ;;  %v1148_v43 = vsel %vm1137_vm5, %v1145_v22, %v1147_v56  ;;  %v6808_v21 = vld [vmem:[%s6256_s12 + $0x98] sm:$0xff]   ;;  %v3163_v56 = vshll.u32 %v6656_v24, 16 }
  0xc6   : > { %5427 = vmatprep.subr.bf16.mxu1 %v6095_v44  ;;  %5566 = vmatmul.mubr.msk.bf16.gmra.mrb[16].mxu0 %vm671_vm1, %v2845_v41  ;;  %v1156_v41 = vsel %vm1137_vm5, %v1153_v38, %v1155_v36  ;;  %v2858_v22 = vrot.slane %v6808_v21, 2  ;;  %v3178_v38 = vshrl.u32 %v6673_v34, 16 }
  0xc7   : > { %5569 = vmatprep.mubr.msk.bf16.mxu0 %vm671_vm1, %v2847_v17  ;;  %v3160_v17 = vshrl.u32 %v6656_v24, 16  ;;  %v3165_v6 = vrot.slane %v3163_v56, 3 }
  0xc9   : > { %5428 = vmatpush3.bf16.msra.mxu1 %v6095_v44  ;;  %v2856_v44 = vrot.slane %v6803_v35, 2  ;;  %v3162_v23 = vrot.slane %v3160_v17, 2  ;;  %v3180_v17 = vrot.slane %v3178_v38, 2  ;;  %v3208_v38 = vshll.u32 %v6706_v54, 16 }
  0xca   : > { %5665 = vmatprep.subr.bf16.mxu1 %v6777_v2 }
  0xcb   : > { %v2857_v49 = vsel %vm2373_vm4, %v2854_v13, %v2856_v44  ;;  %v2859_v10 = vsel %vm2373_vm4, %v2856_v44, %v2858_v22  ;;  %v3172_v13 = vshll.u32 %v6669_v15, 16 }
  0xcc   : > { %5394 = vmatmul.mubr.msk.bf16.gmra.mrb[4].mxu1 %vm671_vm1, %v1146_v62  ;;  %v1157_v62 = vrot.slane %v6448_v14, 1 }
  0xcd   : > { %5397 = vmatprep.mubr.msk.bf16.mxu1 %vm671_vm1, %v1148_v43  ;;  %v6093_v43 = vld [vmem:[%s6256_s12 + $0xa0] ss:$0 sps:$4 sm:$0x33]  }
  0xce   : > { %5570 = vmatmul.mubr.msk.bf16.gmra.mrb[20].mxu0 %vm671_vm1, %v2849_v58  ;;  %v3154_v58 = vrot.slane %v3152_v50, 2  ;;  %v2860_v14 = vrot.slane %v6093_v43, 2  ;;  %v1160_v27 = vsel %vm1137_vm5, %v1157_v62, %v1159_v63 }
  0xcf   : > { %5573 = vmatprep.mubr.msk.bf16.mxu0 %vm671_vm1, %v2851_v18  ;;  %v3157_v18 = vrot.slane %v3155_v61, 3  ;;  %v1163_v61 = vrot.slane %v6485_v0, 1  ;;  %v3199_v0 = vshll.u32 %v6689_v51, 16 }
  0xd1   : > { %v3158_v30 = vor.u32 %v3157_v18, %v3154_v58 }
  0xd4   : > { %5398 = vmatmul.mubr.msk.bf16.gmra.mrb[8].mxu1 %vm671_vm1, %v1150_v26  ;;  %v1158_v26 = vsel %vm1137_vm5, %v1155_v36, %v1157_v62  ;;  %v2861_v36 = vsel %vm2373_vm4, %v2858_v22, %v2860_v14  ;;  %v3187_v22 = vshrl.u32 %v6685_v37, 16  ;;  %v1167_v14 = vrot.slane %v6507_v28, 1 }
  0xd5   : > { %5401 = vmatprep.mubr.msk.bf16.mxu1 %vm671_vm1, %v1152_v8  ;;  %v3169_v8 = vshrl.u32 %v6669_v15, 16  ;;  %v3214_v28 = vshrl.u32 %v6710_v32, 16 }
  0xd6   : > { %5574 = vmatmul.mubr.msk.bf16.gmra.mrb[24].mxu0 %vm671_vm1, %v2853_v33  ;;  %v3166_v33 = vor.u32 %v3165_v6, %v3162_v23  ;;  %v3189_v23 = vrot.slane %v3187_v22, 2 }
  0xd7   : > { %5577 = vmatprep.mubr.msk.bf16.mxu0 %vm671_vm1, %v2855_v39  ;;  %v3181_v39 = vshll.u32 %v6673_v34, 16  ;;  %v3171_v44 = vrot.slane %v3169_v8, 2  ;;  %v3201_v8 = vrot.slane %v3199_v0, 3  ;;  %v1173_v0 = vrot.slane %v6546_v4, 1 }
  0xd8   : > { %v3167_v50 = vsel %vm3150_vm6, %v3158_v30, %v3166_v33 }
  0xd9   : > { %v3183_v56 = vrot.slane %v3181_v39, 3 }
  0xdb   : > { %v3184_v58 = vor.u32 %v3183_v56, %v3180_v17  ;;  %v1171_v17 = vrot.slane %v6530_v48, 1  ;;  %v3216_v56 = vrot.slane %v3214_v28, 2  ;;  %v3235_v48 = vshll.u32 %v6730_v9, 16 }
  0xdc   : > { %5402 = vmatmul.mubr.msk.bf16.gmra.mrb[12].mxu1 %vm671_vm1, %v1154_v12  ;;  %v1161_v12 = vrot.slane %v6477_v52, 1  ;;  %v3190_v52 = vshll.u32 %v6685_v37, 16 }
  0xdd   : > { %5405 = vmatprep.mubr.msk.bf16.mxu1 %vm671_vm1, %v1156_v41  ;;  %v3174_v41 = vrot.slane %v3172_v13, 3  ;;  %v6096_v13 = vld [vmem:[%s6261_s15 + $0x88] sm:$0xff]   ;;  %v1174_v4 = vsel %vm1137_vm5, %v1171_v17, %v1173_v0 }
  0xde   : > { %5578 = vmatmul.mubr.msk.bf16.gmra.mrb[28].mxu0 %vm671_vm1, %v2857_v49  ;;  %v1162_v62 = vsel %vm1137_vm5, %v1159_v63, %v1161_v12  ;;  %v1164_v43 = vsel %vm1137_vm5, %v1161_v12, %v1163_v61  ;;  %v1165_v63 = vrot.slane %v6500_v20, 1  ;;  %v3192_v6 = vrot.slane %v3190_v52, 3 }
  0xdf   : > { %5581 = vmatprep.mubr.msk.bf16.mxu0 %vm671_vm1, %v2859_v10  ;;  %v3175_v49 = vor.u32 %v3174_v41, %v3171_v44  ;;  %v3196_v10 = vshrl.u32 %v6689_v51, 16  ;;  %v3205_v20 = vshrl.u32 %v6706_v54, 16  ;;  %v3217_v12 = vshll.u32 %v6710_v32, 16 }
  0xe0   : > { %v1166_v30 = vsel %vm1137_vm5, %v1163_v61, %v1165_v63  ;;  %v1168_v39 = vsel %vm1137_vm5, %v1165_v63, %v1167_v14  ;;  %v1169_v44 = vrot.slane %v6525_v46, 1  ;;  %v3223_v52 = vshrl.u32 %v6725_v45, 16 }
  0xe1   : > { %v3176_v18 = vsel %vm3150_vm6, %v3166_v33, %v3175_v49  ;;  %v3193_v33 = vor.u32 %v3192_v6, %v3189_v23  ;;  %v3207_v41 = vrot.slane %v3205_v20, 2  ;;  %v3226_v46 = vshll.u32 %v6725_v45, 16 }
  0xe2   : > { %v3225_v63 = vrot.slane %v3223_v52, 2  ;;  %v1589_v6 = vrot.slane %v6337_v16, 1  ;;  %v3244_v20 = vshll.u32 %v6743_v31, 16  ;;  %v3259_v52 = vshrl.u32 %v6762_v53, 16 }
  0xe3   : > { %v3228_v23 = vrot.slane %v3226_v46, 3  ;;  %v3262_v46 = vshll.u32 %v6762_v53, 16 }
  0xe4   : > { %5406 = vmatmul.mubr.msk.bf16.gmra.mrb[16].mxu1 %vm671_vm1, %v1158_v26  ;;  %v3185_v26 = vsel %vm3150_vm6, %v3175_v49, %v3184_v58  ;;  %v1170_v49 = vsel %vm1137_vm5, %v1167_v14, %v1169_v44  ;;  %v6101_v14 = vld [vmem:[%s6256_s12 + $0x10] sm:$0xff]  }
  0xe5   : > { %5409 = vmatprep.mubr.msk.bf16.mxu1 %vm671_vm1, %v1160_v27  ;;  %v3198_v27 = vrot.slane %v3196_v10, 2  ;;  %v3232_v10 = vshrl.u32 %v6730_v9, 16 }
  0xe6   : > { %5582 = vmatmul.mubr.msk.bf16.gmra.mrb[32].mxu0 %vm671_vm1, %v2861_v36 }
  0xe7   : > { %5589 = vmatprep.mubr.msk.bf16.mxu0 %vm671_vm1, %v3167_v50  ;;  %v3202_v36 = vor.u32 %v3201_v8, %v3198_v27  ;;  %v3210_v50 = vrot.slane %v3208_v38, 3  ;;  %v1590_v27 = vrot.slane %v6101_v14, 1  ;;  %v3234_v8 = vrot.slane %v3232_v10, 2  ;;  %v6105_v14 = vld [vmem:[%s6256_s12 + $0x30] sm:$0xff]  }
  0xe8   : > { %v3268_v10 = vshrl.u32 %v6768_v60, 16 }
  0xe9   : > { %v3203_v61 = vsel %vm3150_vm6, %v3193_v33, %v3202_v36  ;;  %v3211_v22 = vor.u32 %v3210_v50, %v3207_v41  ;;  %v1591_v16 = vsel %vm1137_vm5, %v1589_v6, %v1590_v27  ;;  %v3246_v41 = vrot.slane %v3244_v20, 3 }
  0xea   : > { %v3264_v6 = vrot.slane %v3262_v46, 3  ;;  %v3277_v20 = vshrl.u32 %v6785_v57, 16  ;;  %v3298_v46 = vshll.u32 %v6803_v35, 16 }
  0xec   : > { %5410 = vmatmul.mubr.msk.bf16.gmra.mrb[20].mxu1 %vm671_vm1, %v1162_v62  ;;  %v3219_v62 = vrot.slane %v3217_v12, 3  ;;  %v6102_v12 = vld [vmem:[%s6256_s12 + $0x18] sm:$0xff]  }
  0xed   : > { %5413 = vmatprep.mubr.msk.bf16.mxu1 %vm671_vm1, %v1164_v43  ;;  %v1172_v43 = vsel %vm1137_vm5, %v1169_v44, %v1171_v17 }
  0xee   : > { %5590 = vmatmul.mubr.msk.bf16.vlgmr.msra.gmra.mrb[0].mxu0 %vm671_vm1, %v3176_v18  ;;  %v3212_v18 = vsel %vm3150_vm6, %v3202_v36, %v3211_v22  ;;  %v3253_v36 = vshll.u32 %v6748_v40, 16 }
  0xef   : > { %5626 = vmatpush3.bf16.msra.mxu0 %v6698_v47  ;;  %5593 = vmatprep.mubr.msk.bf16.mxu0 %vm671_vm1, %v3185_v26  ;;  %v3194_v47 = vsel %vm3150_vm6, %v3184_v58, %v3193_v33  ;;  %v3220_v58 = vor.u32 %v3219_v62, %v3216_v56  ;;  %v3241_v33 = vshrl.u32 %v6743_v31, 16 }
  0xf0   : > { %5627 = vmatprep.subr.bf16.mxu0 %v6096_v13  ;;  %v3255_v62 = vrot.slane %v3253_v36, 3  ;;  %v3289_v36 = vshll.u32 %v6790_v25, 16 }
  0xf1   : > { %v3221_v26 = vsel %vm3150_vm6, %v3211_v22, %v3220_v58  ;;  %v3243_v44 = vrot.slane %v3241_v33, 2 }
  0xf3   : > { %5628 = vmatpush3.bf16.msra.mxu0 %v6096_v13  ;;  %v3237_v13 = vrot.slane %v3235_v48, 3  ;;  %v3247_v22 = vor.u32 %v3246_v41, %v3243_v44  ;;  %v3271_v48 = vshll.u32 %v6768_v60, 16  ;;  %v3279_v44 = vrot.slane %v3277_v20, 2 }
  0xf4   : > { %5414 = vmatmul.mubr.msk.bf16.gmra.mrb[24].mxu1 %vm671_vm1, %v1166_v30  ;;  %v3229_v30 = vor.u32 %v3228_v23, %v3225_v63  ;;  %v3261_v23 = vrot.slane %v3259_v52, 2  ;;  %v3295_v52 = vshrl.u32 %v6803_v35, 16 }
  0xf5   : > { %5417 = vmatprep.mubr.msk.bf16.mxu1 %vm671_vm1, %v1168_v39  ;;  %v3238_v38 = vor.u32 %v3237_v13, %v3234_v8  ;;  %v3250_v39 = vshrl.u32 %v6748_v40, 16  ;;  %v3270_v8 = vrot.slane %v3268_v10, 2  ;;  %v3273_v13 = vrot.slane %v3271_v48, 3 }
  0xf6   : > { %5594 = vmatmul.mubr.msk.bf16.gmra.mrb[4].mxu0 %vm671_vm1, %v3194_v47  ;;  %v3230_v28 = vsel %vm3150_vm6, %v3220_v58, %v3229_v30  ;;  %v1592_v47 = vrot.slane %v6102_v12, 1  ;;  %v3265_v33 = vor.u32 %v3264_v6, %v3261_v23  ;;  %v6107_v12 = vld [vmem:[%s6256_s12 + $0x38] sm:$0xff]   ;;  %v3304_v10 = vshrl.u32 %v6808_v21, 16 }
  0xf7   : > { %5597 = vmatprep.mubr.msk.bf16.mxu0 %vm671_vm1, %v3203_v61  ;;  %v3239_v50 = vsel %vm3150_vm6, %v3229_v30, %v3238_v38  ;;  %v6103_v61 = vld [vmem:[%s6256_s12 + $0x20] sm:$0xff]   ;;  %v3252_v56 = vrot.slane %v3250_v39, 2  ;;  %v3248_v0 = vsel %vm3150_vm6, %v3238_v38, %v3247_v22  ;;  %v3274_v38 = vor.u32 %v3273_v13, %v3270_v8 }
  0xf8   : > { %v1594_v17 = vrot.slane %v6103_v61, 1  ;;  %v3286_v39 = vshrl.u32 %v6790_v25, 16  ;;  %v6108_v61 = vld [vmem:[%s6256_s12 + $0x40] sm:$0xff]   ;;  %v3307_v48 = vshll.u32 %v6808_v21, 16  ;;  %v3297_v23 = vrot.slane %v3295_v52, 2 }
  0xf9   : > { %v3256_v58 = vor.u32 %v3255_v62, %v3252_v56  ;;  %v3291_v62 = vrot.slane %v3289_v36, 3  ;;  %v3300_v6 = vrot.slane %v3298_v46, 3  ;;  %v3306_v13 = vrot.slane %v3304_v10, 2 }
  0xfa   : > { %v3288_v56 = vrot.slane %v3286_v39, 2  ;;  %v3600_v39 = vld [vmem:[%s6256_s12 + $0x10] sm:$0x8] }
  0xfc   : > { %5418 = vmatmul.mubr.msk.bf16.gmra.mrb[28].mxu1 %vm671_vm1, %v1170_v49  ;;  %v1593_v49 = vsel %vm1137_vm5, %v1590_v27, %v1592_v47  ;;  %v1598_v27 = vrot.slane %v6105_v14, 1 }
  0xfd   : > { %5421 = vmatprep.mubr.msk.bf16.mxu1 %vm671_vm1, %v1172_v43  ;;  %v1595_v43 = vsel %vm1137_vm5, %v1592_v47, %v1594_v17  ;;  %v1600_v47 = vrot.slane %v6107_v12, 1 }
  0xfe   : > { %5598 = vmatmul.mubr.msk.bf16.gmra.mrb[8].mxu0 %vm671_vm1, %v3212_v18  ;;  %v6104_v18 = vld [vmem:[%s6256_s12 + $0x28] sm:$0xff]  }
  0xff   : > { %5601 = vmatprep.mubr.msk.bf16.mxu0 %vm671_vm1, %v3221_v26  ;;  %v1596_v63 = vrot.slane %v6104_v18, 1  ;;  %v3257_v26 = vsel %vm3150_vm6, %v3247_v22, %v3256_v58  ;;  %v6109_v18 = vld [vmem:[%s6256_s12 + $0x48] sm:$0xff]  }
 0x101   : > { %v1597_v30 = vsel %vm1137_vm5, %v1594_v17, %v1596_v63  ;;  %v1602_v17 = vrot.slane %v6108_v61, 1  ;;  %v5027_v61 = vcombine.low %v3600_v39, %v6641_v5  ;;  %v1612_v5 = vrot.slane %v6592_v7, 1 }
 0x104   : > { %5422 = vmatmul.mubr.msk.bf16.gmra.mrb[32].mxu1 %vm671_vm1, %v1174_v4  ;;  %v6106_v4 = vld [vmem:[%s6261_s15 + $0x48] sm:$0xff]  }
 0x105   : > { %5429 = vmatprep.mubr.msk.bf16.mxu1 %vm671_vm1, %v1591_v16  ;;  %v1599_v16 = vsel %vm1137_vm5, %v1596_v63, %v1598_v27  ;;  %v1604_v63 = vrot.slane %v6109_v18, 1  ;;  %v1616_v18 = vrot.slane %v6613_v55, 1 }
 0x106   : > { %5602 = vmatmul.mubr.msk.bf16.gmra.mrb[12].mxu0 %vm671_vm1, %v3230_v28  ;;  %v3266_v28 = vsel %vm3150_vm6, %v3256_v58, %v3265_v33  ;;  %v3292_v58 = vor.u32 %v3291_v62, %v3288_v56 }
 0x107   : > { %5605 = vmatprep.mubr.msk.bf16.mxu0 %vm671_vm1, %v3239_v50  ;;  %v3275_v50 = vsel %vm3150_vm6, %v3265_v33, %v3274_v38  ;;  %v3301_v33 = vor.u32 %v3300_v6, %v3297_v23  ;;  %v1618_v23 = vrot.slane %v6617_v59, 1 }
 0x109   : > { %v3302_v36 = vsel %vm3150_vm6, %v3292_v58, %v3301_v33  ;;  %v1619_v6 = vsel %vm1137_vm5, %v1616_v18, %v1618_v23 }
 0x10c   : > { %5430 = vmatmul.mubr.msk.bf16.vlgmr.msra.gmra.mrb[0].mxu1 %vm671_vm1, %v1593_v49  ;;  %v1601_v49 = vsel %vm1137_vm5, %v1598_v27, %v1600_v47  ;;  %v6110_v27 = vld [vmem:[%s6256_s12 + $0x50] sm:$0xff]  }
 0x10d   : > { %5433 = vmatprep.mubr.msk.bf16.mxu1 %vm671_vm1, %v1595_v43  ;;  %5667 = vmatpush3.bf16.msra.mxu1 %v6777_v2  ;;  %v3280_v2 = vshll.u32 %v6785_v57, 16  ;;  %v1603_v43 = vsel %vm1137_vm5, %v1600_v47, %v1602_v17  ;;  %v1606_v8 = vrot.slane %v6110_v27, 1 }
 0x10e   : > { %5666 = vmatprep.subr.bf16.mxu1 %v6106_v4  ;;  %5606 = vmatmul.mubr.msk.bf16.gmra.mrb[16].mxu0 %vm671_vm1, %v3248_v0 }
 0x10f   : > { %5609 = vmatprep.mubr.msk.bf16.mxu0 %vm671_vm1, %v3257_v26  ;;  %v3282_v41 = vrot.slane %v3280_v2, 3  ;;  %v6943_v26 = vld [vmem:[%s6256_s12 + $0xa0] ss:$0 sps:$4 sm:$0x77]  }
 0x110   : > { %v3313_v20 = vshrl.u32 %v6943_v26, 16  ;;  %v3316_v2 = vshll.u32 %v6943_v26, 16 }
 0x111   : > { %5668 = vmatpush3.bf16.msra.mxu1 %v6106_v4  ;;  %v3283_v22 = vor.u32 %v3282_v41, %v3279_v44  ;;  %v3309_v4 = vrot.slane %v3307_v48, 3  ;;  %v3615_v48 = vrot.slane %v6673_v34, 3  ;;  %v3617_v34 = vrot.slane %v6685_v37, 3 }
 0x112   : > { %v3315_v47 = vrot.slane %v3313_v20, 2  ;;  %v3318_v44 = vrot.slane %v3316_v2, 3  ;;  %v2017_v37 = vshll.u32 %v6579_v42, 16  ;;  %v6099_v20 = vld [vmem:[%s6256_s12 + $0x98] ss:$0 sps:$4 sm:$0x11]  }
 0x113   : > { %v3284_v0 = vsel %vm3150_vm6, %v3274_v38, %v3283_v22  ;;  %v3293_v14 = vsel %vm3150_vm6, %v3283_v22, %v3292_v58  ;;  %v3310_v38 = vor.u32 %v3309_v4, %v3306_v13  ;;  %v3611_v22 = vrot.slane %v6656_v24, 3 }
 0x114   : > { %5434 = vmatmul.mubr.msk.bf16.gmra.mrb[4].mxu1 %vm671_vm1, %v1597_v30  ;;  %v1605_v30 = vsel %vm1137_vm5, %v1602_v17, %v1604_v63  ;;  %v3319_v56 = vor.u32 %v3318_v44, %v3315_v47  ;;  %v3613_v24 = vrot.slane %v6669_v15, 3  ;;  %v3618_v27 = vsel %vm3609_vm7, %v3615_v48, %v3617_v34 }
 0x115   : > { %5437 = vmatprep.mubr.msk.bf16.mxu1 %vm671_vm1, %v1599_v16  ;;  %v1607_v16 = vsel %vm1137_vm5, %v1604_v63, %v1606_v8  ;;  %v3311_v41 = vsel %vm3150_vm6, %v3301_v33, %v3310_v38  ;;  %v1622_v4 = vrot.slane %v6633_v11, 1  ;;  %v3621_v33 = vrot.slane %v6706_v54, 3 }
 0x116   : > { %5610 = vmatmul.mubr.msk.bf16.gmra.mrb[20].mxu0 %vm671_vm1, %v3266_v28  ;;  %v6111_v28 = vld [vmem:[%s6256_s12 + $0x58] sm:$0xff]   ;;  %v3320_v52 = vsel %vm3150_vm6, %v3310_v38, %v3319_v56  ;;  %v3616_v63 = vsel %vm3609_vm7, %v3613_v24, %v3615_v48  ;;  %v2019_v39 = vrot.slane %v2017_v37, 2  ;;  %v2032_v44 = vshrl.u32 %v6597_v29, 16 }
 0x117   : > { %5613 = vmatprep.mubr.msk.bf16.mxu0 %vm671_vm1, %v3275_v50  ;;  %v1608_v12 = vrot.slane %v6111_v28, 1  ;;  %v1610_v50 = vrot.slane %v6579_v42, 1  ;;  %v2023_v28 = vshrl.u32 %v6592_v7, 16  ;;  %v3627_v56 = vrot.slane %v6730_v9, 3 }
 0x118   : > { %v2053_v9 = vshll.u32 %v6617_v59, 16 }
 0x119   : > { %v1609_v17 = vsel %vm1137_vm5, %v1606_v8, %v1608_v12  ;;  %v1611_v62 = vsel %vm1137_vm5, %v1608_v12, %v1610_v50  ;;  %v1613_v58 = vsel %vm1137_vm5, %v1610_v50, %v1612_v5  ;;  %v1620_v8 = vrot.slane %v6629_v1, 1 }
 0x11a   : > { %v2026_v12 = vshll.u32 %v6592_v7, 16  ;;  %v3625_v50 = vrot.slane %v6725_v45, 3  ;;  %v2044_v45 = vshll.u32 %v6613_v55, 16 }
 0x11b   : > { %v1623_v2 = vsel %vm1137_vm5, %v1620_v8, %v1622_v4 }
 0x11c   : > { %5438 = vmatmul.mubr.msk.bf16.gmra.mrb[8].mxu1 %vm671_vm1, %v1601_v49  ;;  %v3610_v49 = vrot.slane %v5027_v61, 3  ;;  %v2025_v61 = vrot.slane %v2023_v28, 1 }
 0x11d   : > { %5441 = vmatprep.mubr.msk.bf16.mxu1 %vm671_vm1, %v1603_v43  ;;  %v1614_v43 = vrot.slane %v6597_v29, 1 }
 0x11e   : > { %5614 = vmatmul.mubr.msk.bf16.gmra.mrb[24].mxu0 %vm671_vm1, %v3284_v0  ;;  %v3612_v46 = vsel %vm3609_vm7, %v3610_v49, %v3611_v22  ;;  %v3614_v0 = vsel %vm3609_vm7, %v3611_v22, %v3613_v24 }
 0x11f   : > { %5617 = vmatprep.mubr.msk.bf16.mxu0 %vm671_vm1, %v3293_v14  ;;  %v1615_v10 = vsel %vm1137_vm5, %v1612_v5, %v1614_v43  ;;  %v1617_v15 = vsel %vm1137_vm5, %v1614_v43, %v1616_v18  ;;  %v3619_v14 = vrot.slane %v6689_v51, 3  ;;  %v1621_v51 = vsel %vm1137_vm5, %v1618_v23, %v1620_v8 }
 0x120   : > { %v3628_v5 = vsel %vm3609_vm7, %v3625_v50, %v3627_v56  ;;  %v2055_v18 = vrot.slane %v2053_v9, 2  ;;  %v2059_v23 = vshrl.u32 %v6629_v1, 16 }
 0x121   : > { %v3620_v13 = vsel %vm3609_vm7, %v3617_v34, %v3619_v14 }
 0x122   : > { %v2061_v8 = vrot.slane %v2059_v23, 1 }
 0x124   : > { %5442 = vmatmul.mubr.msk.bf16.gmra.mrb[12].mxu1 %vm671_vm1, %v1605_v30  ;;  %v2014_v30 = vshrl.u32 %v6579_v42, 16  ;;  %v1624_v42 = vrot.slane %v6099_v20, 1  ;;  %v2080_v20 = vshll.u32 %v6649_v19, 16 }
 0x125   : > { %5445 = vmatprep.mubr.msk.bf16.mxu1 %vm671_vm1, %v1607_v16  ;;  %v3623_v16 = vrot.slane %v6710_v32, 3  ;;  %v2035_v32 = vshll.u32 %v6597_v29, 16 }
 0x126   : > { %5618 = vmatmul.mubr.msk.bf16.gmra.mrb[28].mxu0 %vm671_vm1, %v3302_v36  ;;  %v2016_v38 = vrot.slane %v2014_v30, 1  ;;  %v3622_v36 = vsel %vm3609_vm7, %v3619_v14, %v3621_v33 }
 0x127   : > { %5621 = vmatprep.mubr.msk.bf16.mxu0 %vm671_vm1, %v3311_v41  ;;  %v3624_v54 = vsel %vm3609_vm7, %v3621_v33, %v3623_v16  ;;  %v1625_v41 = vsel %vm1137_vm5, %v1622_v4, %v1624_v42  ;;  %v2037_v49 = vrot.slane %v2035_v32, 2  ;;  %v3626_v29 = vsel %vm3609_vm7, %v3623_v16, %v3625_v50 }
 0x128   : > { %v2020_v47 = vor.u32 %v2019_v39, %v2016_v38  ;;  %v2077_v33 = vshrl.u32 %v6649_v19, 16  ;;  %v3637_v16 = vrot.slane %v6785_v57, 3  ;;  %v2082_v39 = vrot.slane %v2080_v20, 2 }
 0x129   : > { %v3639_v42 = vrot.slane %v6790_v25, 3  ;;  %v3645_v32 = vrot.slane %v6943_v26, 3 }
 0x12a   : > { %v2021_v7 = vsel %vm1914_vm3, %v6492_v3, %v2020_v47  ;;  %v2050_v3 = vshrl.u32 %v6617_v59, 16  ;;  %v2079_v38 = vrot.slane %v2077_v33, 1 }
 0x12c   : > { %5446 = vmatmul.mubr.msk.bf16.gmra.mrb[16].mxu1 %vm671_vm1, %v1609_v17  ;;  %v2028_v17 = vrot.slane %v2026_v12, 2  ;;  %v2083_v28 = vor.u32 %v2082_v39, %v2079_v38  ;;  %v3640_v12 = vsel %vm3609_vm7, %v3637_v16, %v3639_v42 }
 0x12d   : > { %5449 = vmatprep.mubr.msk.bf16.mxu1 %vm671_vm1, %v1611_v62  ;;  %v2034_v62 = vrot.slane %v2032_v44, 1 }
 0x12e   : > { %5622 = vmatmul.mubr.msk.bf16.gmra.mrb[32].mxu0 %vm671_vm1, %v3320_v52  ;;  %v2029_v22 = vor.u32 %v2028_v17, %v2025_v61  ;;  %v2041_v52 = vshrl.u32 %v6613_v55, 16  ;;  %v3631_v55 = vrot.slane %v6748_v40, 3  ;;  %v2071_v40 = vshll.u32 %v6633_v11, 16 }
 0x12f   : > { %5629 = vmatprep.mubr.msk.bf16.mxu0 %vm671_vm1, %v3612_v46  ;;  %v2038_v46 = vor.u32 %v2037_v49, %v2034_v62 }
 0x130   : > { %v2030_v43 = vsel %vm1914_vm3, %v2020_v47, %v2029_v22  ;;  %v2043_v24 = vrot.slane %v2041_v52, 1  ;;  %v2073_v37 = vrot.slane %v2071_v40, 2  ;;  %v3643_v47 = vrot.slane %v6808_v21, 3 }
 0x131   : > { %v2039_v48 = vsel %vm1914_vm3, %v2029_v22, %v2038_v46 }
 0x134   : > { %5450 = vmatmul.mubr.msk.bf16.gmra.mrb[20].mxu1 %vm671_vm1, %v1613_v58  ;;  %v3629_v58 = vrot.slane %v6743_v31, 3 }
 0x135   : > { %5453 = vmatprep.mubr.msk.bf16.mxu1 %vm671_vm1, %v1615_v10  ;;  %v2046_v10 = vrot.slane %v2044_v45, 2 }
 0x136   : > { %5630 = vmatmul.mubr.msk.bf16.vlgmr.msra.gmra.mrb[0].mxu0 %vm671_vm1, %v3614_v0  ;;  %v2052_v0 = vrot.slane %v2050_v3, 1  ;;  %v3630_v59 = vsel %vm3609_vm7, %v3627_v56, %v3629_v58  ;;  %v3632_v31 = vsel %vm3609_vm7, %v3629_v58, %v3631_v55 }
 0x137   : > { %5633 = vmatprep.mubr.msk.bf16.mxu0 %vm671_vm1, %v3616_v63  ;;  %v2047_v63 = vor.u32 %v2046_v10, %v2043_v24  ;;  %v3928_v10 = vld [vmem:[#allocation2 + $0x10] sm:$0xff] }
 0x138   : > { %v2056_v34 = vor.u32 %v2055_v18, %v2052_v0  ;;  %v3926_v0 = vld [vmem:[#allocation2] sm:$0xff] }
 0x139   : > { %v2048_v14 = vsel %vm1914_vm3, %v2038_v46, %v2047_v63 }
 0x13a   : > { %v2057_v4 = vsel %vm1914_vm3, %v2047_v63, %v2056_v34  ;;  %v3929_v63 = vld [vmem:[#allocation2 + $0x18] sm:$0xff] }
 0x13c   : > { %5454 = vmatmul.mubr.msk.bf16.gmra.mrb[24].mxu1 %vm671_vm1, %v1617_v15  ;;  %v2062_v15 = vshll.u32 %v6629_v1, 16  ;;  %v3635_v1 = vrot.slane %v6768_v60, 3 }
 0x13d   : > { %5457 = vmatprep.mubr.msk.bf16.mxu1 %vm671_vm1, %v1619_v6  ;;  %v2068_v6 = vshrl.u32 %v6633_v11, 16 }
 0x13e   : > { %5634 = vmatmul.mubr.msk.bf16.gmra.mrb[4].mxu0 %vm671_vm1, %v3618_v27  ;;  %v3633_v27 = vrot.slane %v6762_v53, 3  ;;  %v3638_v19 = vsel %vm3609_vm7, %v3635_v1, %v3637_v16 }
 0x13f   : > { %5637 = vmatprep.mubr.msk.bf16.mxu0 %vm671_vm1, %v3620_v13  ;;  %v2064_v13 = vrot.slane %v2062_v15, 2  ;;  %v2070_v30 = vrot.slane %v2068_v6, 1 }
 0x140   : > { %v3634_v11 = vsel %vm3609_vm7, %v3631_v55, %v3633_v27  ;;  %v3636_v53 = vsel %vm3609_vm7, %v3633_v27, %v3635_v1 }
 0x144   : > { %5458 = vmatmul.mubr.msk.bf16.gmra.mrb[28].mxu1 %vm671_vm1, %v1621_v51  ;;  %v2065_v51 = vor.u32 %v2064_v13, %v2061_v8  ;;  %v3932_v13 = vld [vmem:[#allocation2 + $0x30] sm:$0xff] }
 0x145   : > { %5461 = vmatprep.mubr.msk.bf16.mxu1 %vm671_vm1, %v1623_v2  ;;  %v2074_v2 = vor.u32 %v2073_v37, %v2070_v30  ;;  %v3930_v30 = vld [vmem:[#allocation2 + $0x20] sm:$0xff] }
 0x146   : > { %5638 = vmatmul.mubr.msk.bf16.gmra.mrb[8].mxu0 %vm671_vm1, %v3622_v36  ;;  %v2066_v60 = vsel %vm1914_vm3, %v2056_v34, %v2065_v51  ;;  %v3927_v34 = vld [vmem:[#allocation2 + $0x8] sm:$0xff] }
 0x147   : > { %5641 = vmatprep.mubr.msk.bf16.mxu0 %vm671_vm1, %v3624_v54  ;;  %v2075_v36 = vsel %vm1914_vm3, %v2065_v51, %v2074_v2  ;;  %v2084_v57 = vsel %vm1914_vm3, %v2074_v2, %v2083_v28  ;;  %v3641_v54 = vrot.slane %v6803_v35, 3  ;;  %v3933_v51 = vld [vmem:[#allocation2 + $0x38] sm:$0xff]  ;;  %v3931_v2 = vld [vmem:[#allocation2 + $0x28] sm:$0xff] }
 0x149   : > { %v3642_v25 = vsel %vm3609_vm7, %v3639_v42, %v3641_v54  ;;  %v3644_v44 = vsel %vm3609_vm7, %v3641_v54, %v3643_v47  ;;  %v3936_v42 = vld [vmem:[#allocation2 + $0x50] sm:$0xff] }
 0x14c   : > { %5462 = vmatmul.mubr.msk.bf16.gmra.mrb[32].mxu1 %vm671_vm1, %v1625_v41  ;;  %v3646_v41 = vsel %vm3609_vm7, %v3643_v47, %v3645_v32  ;;  %v3937_v47 = vld [vmem:[#allocation2 + $0x58] sm:$0xff] }
 0x14d   : > { %5489 = vmatprep.mubr.msk.bf16.mxu1 %vm671_vm1, %v2021_v7 }
 0x14e   : > { %5642 = vmatmul.mubr.msk.bf16.gmra.mrb[12].mxu0 %vm671_vm1, %v3626_v29 }
 0x14f   : > { %5645 = vmatprep.mubr.msk.bf16.mxu0 %vm671_vm1, %v3628_v5 }
 0x154   : > { %5490 = vmatmul.mubr.msk.bf16.vlgmr.msra.gmra.mrb[20].mxu1 %vm671_vm1, %v2030_v43 }
 0x155   : > { %5493 = vmatprep.mubr.msk.bf16.mxu1 %vm671_vm1, %v2039_v48 }
 0x156   : > { %5646 = vmatmul.mubr.msk.bf16.gmra.mrb[16].mxu0 %vm671_vm1, %v3630_v59 }
 0x157   : > { %5649 = vmatprep.mubr.msk.bf16.mxu0 %vm671_vm1, %v3632_v31 }
 0x15c   : > { %5494 = vmatmul.mubr.msk.bf16.gmra.mrb[24].mxu1 %vm671_vm1, %v2048_v14 }
 0x15d   : > { %5497 = vmatprep.mubr.msk.bf16.mxu1 %vm671_vm1, %v2057_v4 }
 0x15e   : > { %5650 = vmatmul.mubr.msk.bf16.gmra.mrb[20].mxu0 %vm671_vm1, %v3634_v11 }
 0x15f   : > { %5653 = vmatprep.mubr.msk.bf16.mxu0 %vm671_vm1, %v3636_v53 }
 0x164   : > { %5498 = vmatmul.mubr.msk.bf16.gmra.mrb[28].mxu1 %vm671_vm1, %v2066_v60 }
 0x165   : > { %5501 = vmatprep.mubr.msk.bf16.mxu1 %vm671_vm1, %v2075_v36 }
 0x166   : > { %5654 = vmatmul.mubr.msk.bf16.gmra.mrb[24].mxu0 %vm671_vm1, %v3638_v19 }
 0x167   : > { %5657 = vmatprep.mubr.msk.bf16.mxu0 %vm671_vm1, %v3640_v12  ;;  %v3934_v12 = vld [vmem:[#allocation2 + $0x40] sm:$0xff] }
 0x16c   : > { %5502 = vmatmul.mubr.msk.bf16.gmra.mrb[32].mxu1 %vm671_vm1, %v2084_v57 }
 0x16e   : > { %5658 = vmatmul.mubr.msk.bf16.gmra.mrb[28].mxu0 %vm671_vm1, %v3642_v25 }
 0x16f   : > { %5661 = vmatprep.mubr.msk.bf16.mxu0 %vm671_vm1, %v3644_v44 }
 0x176   : > { %5662 = vmatmul.mubr.msk.bf16.gmra.mrb[32].mxu0 %vm671_vm1, %v3646_v41  ;;  %v3935_v41 = vld [vmem:[#allocation2 + $0x48] sm:$0xff] }
 0x1df   : > { %v5431_v50 = vpop.f32.mrb[0].mxu1 }
 0x1e0   : > { %v1726_v35 = vpop.f32.mrb[1].mxu1 }
 0x1e1   : > { %v5432_v61 = vpop.f32.mrb[2].mxu1 }
 0x1e2   : > { %v1729_v21 = vpop.f32.mrb[3].mxu1 }
 0x1e7   : > { %v5435_v17 = vpop.f32.mrb[4].mxu1 }
 0x1e8   : > { %v1742_v7 = vpop.f32.mrb[5].mxu1 }
 0x1e9   : > { %v5436_v56 = vpop.f32.mrb[6].mxu1 }
 0x1ea   : > { %v1745_v62 = vpop.f32.mrb[7].mxu1 }
 0x1ef   : > { %v5439_v49 = vpop.f32.mrb[8].mxu1 }
 0x1f0   : > { %v1758_v29 = vpop.f32.mrb[9].mxu1 }
 0x1f1   : > { %v5440_v22 = vpop.f32.mrb[10].mxu1 }
 0x1f2   : > { %v7077_v52 = vpop.f32.mrb[11].mxu1 }
 0x1f7   : > { %v7079_v45 = vpop.f32.mrb[12].mxu1 }
 0x1f8   : > { %v7081_v26 = vpop.f32.mrb[13].mxu1 }
 0x1f9   : > { %v7083_v5 = vpop.f32.mrb[14].mxu1 }
 0x1fa   : > { %v7085_v46 = vpop.f32.mrb[15].mxu1 }
 0x1ff   : > { %v7087_v3 = vpop.f32.mrb[16].mxu1 }
 0x200   : > { %v7089_v9 = vpop.f32.mrb[17].mxu1 }
 0x201   : > { %v7091_v43 = vpop.f32.mrb[18].mxu1 }
 0x202   : > { %v7093_v58 = vpop.f32.mrb[19].mxu1 }
 0x209   : > { %v5631_v24 = vpop.f32.mrb[0].mxu0 }
 0x20a   : > { %v5669_v48 = vadd.f32 %v5631_v24, %v5431_v50  ;;  %v3747_v55 = vpop.f32.mrb[1].mxu0 }
 0x20b   : > { %v5670_v18 = vadd.f32 %v3747_v55, %v1726_v35  ;;  %v5632_v59 = vpop.f32.mrb[2].mxu0  ;;  %v3939_v55 = vld [vmem:[#allocation2 + $0x68] sm:$0xff] }
 0x20c   : > { %v3964_v23 = vadd.f32 %v5669_v48, %v3928_v10  ;;  %v5671_v15 = vadd.f32 %v5632_v59, %v5432_v61  ;;  %v3750_v31 = vpop.f32.mrb[3].mxu0 }
 0x20d   : > { %v3962_v6 = vadd.f32 %v5670_v18, %v3926_v0  ;;  %v5672_v40 = vadd.f32 %v3750_v31, %v1729_v21  ;;  %v3944_v31 = vld [vmem:[#allocation2 + $0x90] sm:$0xff] }
 0x20e   : > { %4001 = vst.msk [vmem:[#allocation2 + $0x10] sm:$0xff] %vm3998_vm8, %v3964_v23  ;;  %v3965_v14 = vadd.f32 %v5671_v15, %v3929_v63 }
 0x20f   : > { %3999 = vst.msk [vmem:[#allocation2] sm:$0xff] %vm3998_vm8, %v3962_v6  ;;  %v3963_v27 = vadd.f32 %v5672_v40, %v3927_v34 }
 0x210   : > { %4002 = vst.msk [vmem:[#allocation2 + $0x18] sm:$0xff] %vm3998_vm8, %v3965_v14 }
 0x211   : > { %4000 = vst.msk [vmem:[#allocation2 + $0x8] sm:$0xff] %vm3998_vm8, %v3963_v27  ;;  %v5635_v8 = vpop.f32.mrb[4].mxu0  ;;  %v3945_v27 = vld [vmem:[#allocation2 + $0x98] sm:$0xff] }
 0x212   : > { %v5673_v4 = vadd.f32 %v5635_v8, %v5435_v17  ;;  %v3763_v1 = vpop.f32.mrb[5].mxu0 }
 0x213   : > { %v5674_v37 = vadd.f32 %v3763_v1, %v1742_v7  ;;  %v5636_v11 = vpop.f32.mrb[6].mxu0  ;;  %v3940_v7 = vld [vmem:[#allocation2 + $0x70] sm:$0xff]  ;;  %v3943_v1 = vld [vmem:[#allocation2 + $0x88] sm:$0xff] }
 0x214   : > { %v3968_v33 = vadd.f32 %v5673_v4, %v3932_v13  ;;  %v5675_v20 = vadd.f32 %v5636_v11, %v5436_v56  ;;  %v3766_v53 = vpop.f32.mrb[7].mxu0 }
 0x215   : > { %v3966_v60 = vadd.f32 %v5674_v37, %v3930_v30  ;;  %v5676_v16 = vadd.f32 %v3766_v53, %v1745_v62  ;;  %v3948_v53 = vld [vmem:[#allocation2 + $0xb0] sm:$0xff] }
 0x216   : > { %4005 = vst.msk [vmem:[#allocation2 + $0x30] sm:$0xff] %vm3998_vm8, %v3968_v33  ;;  %v3969_v38 = vadd.f32 %v5675_v20, %v3933_v51 }
 0x217   : > { %4003 = vst.msk [vmem:[#allocation2 + $0x20] sm:$0xff] %vm3998_vm8, %v3966_v60  ;;  %v3967_v39 = vadd.f32 %v5676_v16, %v3931_v2  ;;  %v3946_v16 = vld [vmem:[#allocation2 + $0xa0] sm:$0xff] }
 0x218   : > { %4006 = vst.msk [vmem:[#allocation2 + $0x38] sm:$0xff] %vm3998_vm8, %v3969_v38 }
 0x219   : > { %4004 = vst.msk [vmem:[#allocation2 + $0x28] sm:$0xff] %vm3998_vm8, %v3967_v39  ;;  %v5639_v36 = vpop.f32.mrb[8].mxu0  ;;  %v3949_v39 = vld [vmem:[#allocation2 + $0xb8] sm:$0xff] }
 0x21a   : > { %v5677_v19 = vadd.f32 %v5639_v36, %v5439_v49  ;;  %v3779_v28 = vpop.f32.mrb[9].mxu0  ;;  %v3938_v49 = vld [vmem:[#allocation2 + $0x60] sm:$0xff] }
 0x21b   : > { %v5678_v57 = vadd.f32 %v3779_v28, %v1758_v29  ;;  %v5640_v54 = vpop.f32.mrb[10].mxu0  ;;  %v3947_v28 = vld [vmem:[#allocation2 + $0xa8] sm:$0xff] }
 0x21c   : > { %v3972_v25 = vadd.f32 %v5677_v19, %v3936_v42  ;;  %v5679_v44 = vadd.f32 %v5640_v54, %v5440_v22  ;;  %v3782_v32 = vpop.f32.mrb[11].mxu0 }
 0x21d   : > { %v3970_v50 = vadd.f32 %v5678_v57, %v3934_v12  ;;  %v5680_v35 = vadd.f32 %v3782_v32, %v7077_v52  ;;  %v3941_v52 = vld [vmem:[#allocation2 + $0x78] sm:$0xff] }
 0x21e   : > { %4009 = vst.msk [vmem:[#allocation2 + $0x50] sm:$0xff] %vm3998_vm8, %v3972_v25  ;;  %v3973_v61 = vadd.f32 %v5679_v44, %v3937_v47 }
 0x21f   : > { %4007 = vst.msk [vmem:[#allocation2 + $0x40] sm:$0xff] %vm3998_vm8, %v3970_v50  ;;  %v3971_v21 = vadd.f32 %v5680_v35, %v3935_v41  ;;  %v3952_v35 = vld [vmem:[#allocation2 + $0xd0] sm:$0xff] }
 0x220   : > { %4010 = vst.msk [vmem:[#allocation2 + $0x58] sm:$0xff] %vm3998_vm8, %v3973_v61 }
 0x221   : > { %4008 = vst.msk [vmem:[#allocation2 + $0x48] sm:$0xff] %vm3998_vm8, %v3971_v21  ;;  %v5643_v17 = vpop.f32.mrb[12].mxu0 }
 0x222   : > { %v5681_v56 = vadd.f32 %v5643_v17, %v7079_v45  ;;  %v3795_v62 = vpop.f32.mrb[13].mxu0  ;;  %v3950_v17 = vld [vmem:[#allocation2 + $0xc0] sm:$0xff] }
 0x223   : > { %v5682_v29 = vadd.f32 %v3795_v62, %v7081_v26  ;;  %v5644_v22 = vpop.f32.mrb[14].mxu0  ;;  %v3953_v62 = vld [vmem:[#allocation2 + $0xd8] sm:$0xff] }
 0x224   : > { %v3976_v24 = vadd.f32 %v5681_v56, %v3940_v7  ;;  %v5683_v10 = vadd.f32 %v5644_v22, %v7083_v5  ;;  %v3798_v48 = vpop.f32.mrb[15].mxu0 }
 0x225   : > { %v3974_v0 = vadd.f32 %v5682_v29, %v3938_v49  ;;  %v5684_v18 = vadd.f32 %v3798_v48, %v7085_v46  ;;  %v3942_v46 = vld [vmem:[#allocation2 + $0x80] sm:$0xff] }
 0x226   : > { %4013 = vst.msk [vmem:[#allocation2 + $0x70] sm:$0xff] %vm3998_vm8, %v3976_v24  ;;  %v3977_v63 = vadd.f32 %v5683_v10, %v3941_v52  ;;  %v3951_v52 = vld [vmem:[#allocation2 + $0xc8] sm:$0xff] }
 0x227   : > { %v5491_v59 = vpop.f32.mrb[20].mxu1  ;;  %4011 = vst.msk [vmem:[#allocation2 + $0x60] sm:$0xff] %vm3998_vm8, %v3974_v0  ;;  %v3975_v45 = vadd.f32 %v5684_v18, %v3939_v55 }
 0x228   : > { %v2265_v23 = vpop.f32.mrb[21].mxu1  ;;  %4014 = vst.msk [vmem:[#allocation2 + $0x78] sm:$0xff] %vm3998_vm8, %v3977_v63 }
 0x229   : > { %v5492_v15 = vpop.f32.mrb[22].mxu1  ;;  %4012 = vst.msk [vmem:[#allocation2 + $0x68] sm:$0xff] %vm3998_vm8, %v3975_v45  ;;  %v5647_v5 = vpop.f32.mrb[16].mxu0  ;;  %v3956_v45 = vld [vmem:[#allocation2 + $0xf0] sm:$0xff] }
 0x22a   : > { %v2268_v26 = vpop.f32.mrb[23].mxu1  ;;  %v5685_v34 = vadd.f32 %v5647_v5, %v7087_v3  ;;  %v3811_v6 = vpop.f32.mrb[17].mxu0  ;;  %v3954_v5 = vld [vmem:[#allocation2 + $0xe0] sm:$0xff] }
 0x22b   : > { %v5686_v40 = vadd.f32 %v3811_v6, %v7089_v9  ;;  %v5648_v14 = vpop.f32.mrb[18].mxu0  ;;  %v3957_v6 = vld [vmem:[#allocation2 + $0xf8] sm:$0xff] }
 0x22c   : > { %v3980_v8 = vadd.f32 %v5685_v34, %v3944_v31  ;;  %v5687_v13 = vadd.f32 %v5648_v14, %v7091_v43  ;;  %v3814_v4 = vpop.f32.mrb[19].mxu0 }
 0x22d   : > { %v3978_v30 = vadd.f32 %v5686_v40, %v3942_v46  ;;  %v5688_v37 = vadd.f32 %v3814_v4, %v7093_v58 }
 0x22e   : > { %4017 = vst.msk [vmem:[#allocation2 + $0x90] sm:$0xff] %vm3998_vm8, %v3980_v8  ;;  %v3981_v51 = vadd.f32 %v5687_v13, %v3945_v27  ;;  %v3955_v27 = vld [vmem:[#allocation2 + $0xe8] sm:$0xff] }
 0x22f   : > { %v5495_v11 = vpop.f32.mrb[24].mxu1  ;;  %4015 = vst.msk [vmem:[#allocation2 + $0x80] sm:$0xff] %vm3998_vm8, %v3978_v30  ;;  %v3979_v3 = vadd.f32 %v5688_v37, %v3943_v1  ;;  %v3960_v37 = vld [vmem:[#allocation2 + $0x110] sm:$0xff] }
 0x230   : > { %v2281_v33 = vpop.f32.mrb[25].mxu1  ;;  %4018 = vst.msk [vmem:[#allocation2 + $0x98] sm:$0xff] %vm3998_vm8, %v3981_v51 }
 0x231   : > { %v5496_v20 = vpop.f32.mrb[26].mxu1  ;;  %4016 = vst.msk [vmem:[#allocation2 + $0x88] sm:$0xff] %vm3998_vm8, %v3979_v3  ;;  %v5651_v43 = vpop.f32.mrb[20].mxu0 }
 0x232   : > { %v2284_v9 = vpop.f32.mrb[27].mxu1  ;;  %v5689_v2 = vadd.f32 %v5651_v43, %v5491_v59  ;;  %v3827_v60 = vpop.f32.mrb[21].mxu0 }
 0x233   : > { %v5690_v58 = vadd.f32 %v3827_v60, %v2265_v23  ;;  %v5652_v38 = vpop.f32.mrb[22].mxu0  ;;  %v3959_v60 = vld [vmem:[#allocation2 + $0x108] sm:$0xff] }
 0x234   : > { %v3984_v36 = vadd.f32 %v5689_v2, %v3948_v53  ;;  %v5691_v42 = vadd.f32 %v5652_v38, %v5492_v15  ;;  %v3830_v19 = vpop.f32.mrb[23].mxu0 }
 0x235   : > { %v3982_v12 = vadd.f32 %v5690_v58, %v3946_v16  ;;  %v5692_v57 = vadd.f32 %v3830_v19, %v2268_v26  ;;  %v6171_v19 = vmov (!%p5048_p11), 0  }
 0x236   : > { %4021 = vst.msk [vmem:[#allocation2 + $0xb0] sm:$0xff] %vm3998_vm8, %v3984_v36  ;;  %v3985_v47 = vadd.f32 %v5691_v42, %v3949_v39  ;;  %v4163_v36 = vld [vmem:[%s6267_s6 + $0x10] sm:$0xff] (!%p5048_p11)  ;;  %v4161_v42 = vld [vmem:[%s6267_s6] sm:$0xff] (!%p5048_p11)  ;;  %6113 = vset.pattern.permute.xlu1 (!%p5048_p11), %v6171_v19  ;;  %6112 = vset.pattern.permute.xlu0 (!%p5048_p11), %v6171_v19 }
 0x237   : > { %v5499_v54 = vpop.f32.mrb[28].mxu1  ;;  %4019 = vst.msk [vmem:[#allocation2 + $0xa0] sm:$0xff] %vm3998_vm8, %v3982_v12  ;;  %v3983_v44 = vadd.f32 %v5692_v57, %v3947_v28  ;;  %4245 = vperm.xlu1 (!%p5048_p11), %6113, %v4163_v36   ;;  %4235 = vperm.xlu0 (!%p5048_p11), %6112, %v4161_v42   ;;  %v4164_v28 = vld [vmem:[%s6267_s6 + $0x18] sm:$0xff] (!%p5048_p11)  ;;  %v4162_v12 = vld [vmem:[%s6267_s6 + $0x8] sm:$0xff] (!%p5048_p11) }
 0x238   : > { %v2297_v25 = vpop.f32.mrb[29].mxu1  ;;  %4022 = vst.msk [vmem:[#allocation2 + $0xb8] sm:$0xff] %vm3998_vm8, %v3985_v47  ;;  %v4166_v57 = vld [vmem:[%s6267_s6 + $0x28] sm:$0xff] (!%p5048_p11)  ;;  %v4168_v47 = vld [vmem:[%s6267_s6 + $0x38] sm:$0xff] (!%p5048_p11) }
 0x239   : > { %v5500_v32 = vpop.f32.mrb[30].mxu1  ;;  %4020 = vst.msk [vmem:[#allocation2 + $0xa8] sm:$0xff] %vm3998_vm8, %v3983_v44  ;;  %v5655_v50 = vpop.f32.mrb[24].mxu0  ;;  %v4170_v44 = vld [vmem:[%s6267_s6 + $0x48] sm:$0xff] (!%p5048_p11) }
 0x23a   : > { %v2300_v41 = vpop.f32.mrb[31].mxu1  ;;  %v5693_v61 = vadd.f32 %v5655_v50, %v5495_v11  ;;  %v3843_v21 = vpop.f32.mrb[25].mxu0  ;;  %v4171_v50 = vld [vmem:[%s6267_s6 + $0x50] sm:$0xff] (!%p5048_p11) }
 0x23b   : > { %v5694_v7 = vadd.f32 %v3843_v21, %v2281_v33  ;;  %v5656_v56 = vpop.f32.mrb[26].mxu0  ;;  %v3958_v33 = vld [vmem:[#allocation2 + $0x100] sm:$0xff]  ;;  %4250 = vperm.xlu1 (!%p5048_p11), %6113, %v4164_v28   ;;  %4240 = vperm.xlu0 (!%p5048_p11), %6112, %v4162_v12   ;;  %v4176_v21 = vld [vmem:[%s6267_s6 + $0x78] sm:$0xff] (!%p5048_p11) }
 0x23c   : > { %v3988_v49 = vadd.f32 %v5693_v61, %v3952_v35  ;;  %v5695_v29 = vadd.f32 %v5656_v56, %v5496_v20  ;;  %v3846_v22 = vpop.f32.mrb[27].mxu0  ;;  %v4174_v35 = vld [vmem:[%s6267_s6 + $0x68] sm:$0xff] (!%p5048_p11)  ;;  %v4173_v61 = vld [vmem:[%s6267_s6 + $0x60] sm:$0xff] (!%p5048_p11) }
 0x23d   : > { %v3986_v24 = vadd.f32 %v5694_v7, %v3950_v17  ;;  %v5696_v10 = vadd.f32 %v3846_v22, %v2284_v9  ;;  %v3961_v9 = vld [vmem:[#allocation2 + $0x118] sm:$0xff]  ;;  %v4175_v17 = vld [vmem:[%s6267_s6 + $0x70] sm:$0xff] (!%p5048_p11)  ;;  %v4178_v7 = vld [vmem:[%s6267_s6 + $0x88] sm:$0xff] (!%p5048_p11) }
 0x23e   : > { %4025 = vst.msk [vmem:[#allocation2 + $0xd0] sm:$0xff] %vm3998_vm8, %v3988_v49  ;;  %v3989_v55 = vadd.f32 %v5695_v29, %v3953_v62  ;;  %v4177_v56 = vld [vmem:[%s6267_s6 + $0x80] sm:$0xff] (!%p5048_p11)  ;;  %v4180_v62 = vld [vmem:[%s6267_s6 + $0x98] sm:$0xff] (!%p5048_p11)  ;;  %v4179_v49 = vld [vmem:[%s6267_s6 + $0x90] sm:$0xff] (!%p5048_p11) }
 0x23f   : > { %v5503_v48 = vpop.f32.mrb[32].mxu1  ;;  %4023 = vst.msk [vmem:[#allocation2 + $0xc0] sm:$0xff] %vm3998_vm8, %v3986_v24  ;;  %v3987_v18 = vadd.f32 %v5696_v10, %v3951_v52  ;;  %4260 = vperm.xlu1 (!%p5048_p11), %6113, %v4166_v57   ;;  %v4182_v29 = vld [vmem:[%s6267_s6 + $0xa8] sm:$0xff] (!%p5048_p11)  ;;  %v4181_v22 = vld [vmem:[%s6267_s6 + $0xa0] sm:$0xff] (!%p5048_p11)  ;;  %v4184_v52 = vld [vmem:[%s6267_s6 + $0xb8] sm:$0xff] (!%p5048_p11) }
 0x240   : > { %v2313_v0 = vpop.f32.mrb[33].mxu1  ;;  %4026 = vst.msk [vmem:[#allocation2 + $0xd8] sm:$0xff] %vm3998_vm8, %v3989_v55  ;;  %v4183_v24 = vld [vmem:[%s6267_s6 + $0xb0] sm:$0xff] (!%p5048_p11)  ;;  %v4186_v10 = vld [vmem:[%s6267_s6 + $0xc8] sm:$0xff] (!%p5048_p11)  ;;  %v4188_v55 = vld [vmem:[%s6267_s6 + $0xd8] sm:$0xff] (!%p5048_p11) }
 0x241   : > { %v5504_v59 = vpop.f32.mrb[34].mxu1  ;;  %4024 = vst.msk [vmem:[#allocation2 + $0xc8] sm:$0xff] %vm3998_vm8, %v3987_v18  ;;  %v5659_v23 = vpop.f32.mrb[28].mxu0  ;;  %v4190_v18 = vld [vmem:[%s6267_s6 + $0xe8] sm:$0xff] (!%p5048_p11)  ;;  %v4046_v57 = vld [vmem:[#allocation2 + $0x38] sm:$0xff] (!%p5048_p11) }
 0x242   : > { %v2316_v63 = vpop.f32.mrb[35].mxu1  ;;  %v5697_v15 = vadd.f32 %v5659_v23, %v5499_v54  ;;  %v3859_v26 = vpop.f32.mrb[29].mxu0  ;;  %v4165_v54 = vld [vmem:[%s6267_s6 + $0x20] sm:$0xff] (!%p5048_p11)  ;;  %v4191_v23 = vld [vmem:[%s6267_s6 + $0xf0] sm:$0xff] (!%p5048_p11) }
 0x243   : > { %v5698_v31 = vadd.f32 %v3859_v26, %v2297_v25  ;;  %v5660_v34 = vpop.f32.mrb[30].mxu0  ;;  %4255 = vperm.xlu0 (!%p5048_p11), %6112, %v4165_v54   ;;  %v4167_v25 = vld [vmem:[%s6267_s6 + $0x30] sm:$0xff] (!%p5048_p11)  ;;  %4270 = vperm.xlu1 (!%p5048_p11), %6113, %v4168_v47  }
 0x244   : > { %v3992_v46 = vadd.f32 %v5697_v15, %v3956_v45  ;;  %v5699_v40 = vadd.f32 %v5660_v34, %v5500_v32  ;;  %v3862_v14 = vpop.f32.mrb[31].mxu0  ;;  %v4169_v32 = vld [vmem:[%s6267_s6 + $0x40] sm:$0xff] (!%p5048_p11)  ;;  %v4045_v54 = vld [vmem:[#allocation2 + $0x30] sm:$0xff] (!%p5048_p11) }
 0x245   : > { %v3990_v8 = vadd.f32 %v5698_v31, %v3954_v5  ;;  %v5700_v13 = vadd.f32 %v3862_v14, %v2300_v41  ;;  %v4172_v41 = vld [vmem:[%s6267_s6 + $0x58] sm:$0xff] (!%p5048_p11)  ;;  %v7176_v45 = vld [vmem:[%s7366_s2] ss:$0 sm:$0xff] (!%p5048_p11) }
 0x246   : > { %4029 = vst.msk [vmem:[#allocation2 + $0xf0] sm:$0xff] %vm3998_vm8, %v3992_v46  ;;  %v3993_v4 = vadd.f32 %v5699_v40, %v3957_v6  ;;  %v7183_v34 = vld [vmem:[%s7367_s3] ss:$0 sm:$0xff] (!%p5048_p11)  ;;  %v4194_v6 = vld [vmem:[%s6267_s6 + $0x108] sm:$0xff] (!%p5048_p11) }
 0x247   : > { %4027 = vst.msk [vmem:[#allocation2 + $0xe0] sm:$0xff] %vm3998_vm8, %v3990_v8  ;;  %v3991_v1 = vadd.f32 %v5700_v13, %v3955_v27  ;;  %4265 = vperm.xlu0 (!%p5048_p11), %6112, %v4167_v25   ;;  %4280 = vperm.xlu1 (!%p5048_p11), %6113, %v4170_v44   ;;  %v4193_v14 = vld [vmem:[%s6267_s6 + $0x100] sm:$0xff] (!%p5048_p11) }
 0x248   : > { %4030 = vst.msk [vmem:[#allocation2 + $0xf8] sm:$0xff] %vm3998_vm8, %v3993_v4 }
 0x249   : > { %4028 = vst.msk [vmem:[#allocation2 + $0xe8] sm:$0xff] %vm3998_vm8, %v3991_v1  ;;  %v5663_v30 = vpop.f32.mrb[32].mxu0 }
 0x24a   : > { %v5701_v11 = vadd.f32 %v5663_v30, %v5503_v48  ;;  %v3875_v51 = vpop.f32.mrb[33].mxu0  ;;  %v4185_v48 = vld [vmem:[%s6267_s6 + $0xc0] sm:$0xff] (!%p5048_p11) }
 0x24b   : > { %v5702_v3 = vadd.f32 %v3875_v51, %v2313_v0  ;;  %v5664_v20 = vpop.f32.mrb[34].mxu0  ;;  %4038 = sbr.rel (%p5048_p11) target bundleno = 772 (0x304), region = 48  ;;  %4275 = vperm.xlu0 (!%p5048_p11), %6112, %v4169_v32   ;;  %4290 = vperm.xlu1 (!%p5048_p11), %6113, %v4172_v41   ;;  %v4187_v0 = vld [vmem:[%s6267_s6 + $0xd0] sm:$0xff] (!%p5048_p11)  ;;  %v4089_v41 = vmul.f32 (!%p5048_p11), %v7176_v45, %v4046_v57 }
 0x24c   : > { %v3996_v43 = vadd.f32 %v5701_v11, %v3960_v37  ;;  %v5703_v53 = vadd.f32 %v5664_v20, %v5504_v59  ;;  %v3878_v2 = vpop.f32.mrb[35].mxu0  ;;  %v4189_v59 = vld [vmem:[%s6267_s6 + $0xe0] sm:$0xff] (!%p5048_p11)  ;;  %v4196_v37 = vld [vmem:[%s6267_s6 + $0x118] sm:$0xff] (!%p5048_p11)  ;;  %v4195_v11 = vld [vmem:[%s6267_s6 + $0x110] sm:$0xff] (!%p5048_p11) }
 0x24d   : > { %v3994_v16 = vadd.f32 %v5702_v3, %v3958_v33  ;;  %v5704_v58 = vadd.f32 %v3878_v2, %v2316_v63  ;;  %v4192_v63 = vld [vmem:[%s6267_s6 + $0xf8] sm:$0xff] (!%p5048_p11)  ;;  %v4041_v51 = vld [vmem:[#allocation2 + $0x10] sm:$0xff] (!%p5048_p11)  ;;  %v4039_v33 = vld [vmem:[#allocation2] sm:$0xff] (!%p5048_p11) }
 0x24e   : > { %4033 = vst.msk [vmem:[#allocation2 + $0x110] sm:$0xff] %vm3998_vm8, %v3996_v43  ;;  %v3997_v38 = vadd.f32 %v5703_v53, %v3961_v9  ;;  %v4084_v3 = vmul.f32 (!%p5048_p11), %v7176_v45, %v4041_v51  ;;  %v4082_v20 = vmul.f32 (!%p5048_p11), %v7176_v45, %v4039_v33  ;;  %v4042_v9 = vld [vmem:[#allocation2 + $0x18] sm:$0xff] (!%p5048_p11)  ;;  %v4040_v43 = vld [vmem:[#allocation2 + $0x8] sm:$0xff] (!%p5048_p11)  ;;  %v4051_v33 = vld [vmem:[#allocation2 + $0x60] sm:$0xff] (!%p5048_p11) }
 0x24f   : > { %4031 = vst.msk [vmem:[#allocation2 + $0x100] sm:$0xff] %vm3998_vm8, %v3994_v16  ;;  %v3995_v39 = vadd.f32 %v5704_v58, %v3959_v60  ;;  %4285 = vperm.xlu0 (!%p5048_p11), %6112, %v4171_v50   ;;  %4300 = vperm.xlu1 (!%p5048_p11), %6113, %v4174_v35   ;;  %v4085_v60 = vmul.f32 (!%p5048_p11), %v7176_v45, %v4042_v9  ;;  %v4044_v58 = vld [vmem:[#allocation2 + $0x28] sm:$0xff] (!%p5048_p11) }
 0x250   : > { %4034 = vst.msk [vmem:[#allocation2 + $0x118] sm:$0xff] %vm3998_vm8, %v3997_v38  ;;  %v4127_v53 = vadd.f32 (!%p5048_p11), %v7183_v34, %v4084_v3  ;;  %v4125_v2 = vadd.f32 (!%p5048_p11), %v7183_v34, %v4082_v20  ;;  %v4083_v16 = vmul.f32 (!%p5048_p11), %v7176_v45, %v4040_v43  ;;  %v4043_v38 = vld [vmem:[#allocation2 + $0x20] sm:$0xff] (!%p5048_p11)  ;;  %v4088_v50 = vmul.f32 (!%p5048_p11), %v7176_v45, %v4045_v54  ;;  %v4052_v51 = vld [vmem:[#allocation2 + $0x68] sm:$0xff] (!%p5048_p11) }
 0x251   : > { %4032 = vst.msk [vmem:[#allocation2 + $0x108] sm:$0xff] %vm3998_vm8, %v3995_v39  ;;  %v4087_v39 = vmul.f32 (!%p5048_p11), %v7176_v45, %v4044_v58  ;;  %v4086_v36 = vmul.f32 (!%p5048_p11), %v7176_v45, %v4043_v38  ;;  %v4128_v28 = vadd.f32 (!%p5048_p11), %v7183_v34, %v4085_v60  ;;  %v4095_v60 = vmul.f32 (!%p5048_p11), %v7176_v45, %v4052_v51 }
 0x252   : > { %v4199_v42 = vmax.f32 %v4127_v53, 0.0  ;;  %v4197_v19 = vmax.f32 %v4125_v2, 0.0  ;;  %v4126_v12 = vadd.f32 %v7183_v34, %v4083_v16  ;;  %v4094_v16 = vmul.f32 %v7176_v45, %v4051_v33 }
 0x253   : > { %4295 = vperm.xlu0 %6112, %v4173_v61   ;;  %4310 = vperm.xlu1 %6113, %v4176_v21   ;;  %v4130_v44 = vadd.f32 %v7183_v34, %v4087_v39  ;;  %v4129_v32 = vadd.f32 %v7183_v34, %v4086_v36  ;;  %v4200_v21 = vmax.f32 %v4128_v28, 0.0 }
 0x255   : > { %v4073_v8 = vld [vmem:[#allocation2 + $0x110] sm:$0xff] }
 0x256   : > { %v4071_v26 = vld [vmem:[#allocation2 + $0x100] sm:$0xff]  ;;  %v4116_v4 = vmul.f32 %v7176_v45, %v4073_v8 }
 0x257   : > { %4305 = vperm.xlu0 %6112, %v4175_v17   ;;  %4320 = vperm.xlu1 %6113, %v4178_v7   ;;  %v4114_v31 = vmul.f32 %v7176_v45, %v4071_v26  ;;  %v4074_v27 = vld [vmem:[#allocation2 + $0x118] sm:$0xff]  ;;  %v4198_v17 = vmax.f32 %v4126_v12, 0.0  ;;  %v4048_v7 = vld [vmem:[#allocation2 + $0x48] sm:$0xff] }
 0x258   : > { %v4072_v15 = vld [vmem:[#allocation2 + $0x108] sm:$0xff]  ;;  %v4117_v13 = vmul.f32 %v7176_v45, %v4074_v27  ;;  %v7199_v30 = vadd.f32 %v7183_v34, %v4116_v4 }
 0x259   : > { %v4115_v5 = vmul.f32 %v7176_v45, %v4072_v15  ;;  %v7190_v40 = vadd.f32 %v7183_v34, %v4114_v31 }
 0x25a   : > { %v7196_v1 = vadd.f32 %v7183_v34, %v4117_v13 }
 0x25b   : > { %4315 = vperm.xlu0 %6112, %v4177_v56   ;;  %4330 = vperm.xlu1 %6113, %v4180_v62   ;;  %v7187_v46 = vadd.f32 %v7183_v34, %v4115_v5  ;;  %v4047_v56 = vld [vmem:[#allocation2 + $0x40] sm:$0xff] }
 0x25f   : > { %4325 = vperm.xlu0 %6112, %v4179_v49   ;;  %4340 = vperm.xlu1 %6113, %v4182_v29  }
 0x263   : > { %4335 = vperm.xlu0 %6112, %v4181_v22   ;;  %4350 = vperm.xlu1 %6113, %v4184_v52   ;;  %v4202_v52 = vmax.f32 %v4130_v44, 0.0 }
 0x267   : > { %4345 = vperm.xlu0 %6112, %v4183_v24   ;;  %4360 = vperm.xlu1 %6113, %v4186_v10   ;;  %v4201_v24 = vmax.f32 %v4129_v32, 0.0  ;;  %v4132_v10 = vadd.f32 %v7183_v34, %v4089_v41 }
 0x26b   : > { %4355 = vperm.xlu0 %6112, %v4185_v48   ;;  %4370 = vperm.xlu1 %6113, %v4188_v55   ;;  %v4131_v48 = vadd.f32 %v7183_v34, %v4088_v50 }
 0x26f   : > { %4365 = vperm.xlu0 %6112, %v4187_v0   ;;  %4380 = vperm.xlu1 %6113, %v4190_v18   ;;  %v4091_v18 = vmul.f32 %v7176_v45, %v4048_v7 }
 0x273   : > { %4375 = vperm.xlu0 %6112, %v4189_v59   ;;  %4390 = vperm.xlu1 %6113, %v4192_v63   ;;  %v4090_v59 = vmul.f32 %v7176_v45, %v4047_v56  ;;  %v4050_v63 = vld [vmem:[#allocation2 + $0x58] sm:$0xff] }
 0x274   : > { %v4093_v27 = vmul.f32 %v7176_v45, %v4050_v63 }
 0x276   : > { %v4136_v53 = vadd.f32 %v7183_v34, %v4093_v27 }
 0x277   : > { %4385 = vperm.xlu0 %6112, %v4191_v23   ;;  %4400 = vperm.xlu1 %6113, %v4194_v6   ;;  %v4049_v23 = vld [vmem:[#allocation2 + $0x50] sm:$0xff]  ;;  %v4204_v6 = vmax.f32 %v4132_v10, 0.0 }
 0x278   : > { %v4092_v8 = vmul.f32 %v7176_v45, %v4049_v23 }
 0x27a   : > { %v4135_v2 = vadd.f32 %v7183_v34, %v4092_v8 }
 0x27b   : > { %4395 = vperm.xlu0 %6112, %v4193_v14   ;;  %4410 = vperm.xlu1 %6113, %v4196_v37   ;;  %v4203_v14 = vmax.f32 %v4131_v48, 0.0  ;;  %v4134_v37 = vadd.f32 %v7183_v34, %v4091_v18  ;;  %v4058_v18 = vld [vmem:[#allocation2 + $0x98] sm:$0xff] }
 0x27d   : > { %v4206_v39 = vmax.f32 %v4134_v37, 0.0  ;;  %v4060_v37 = vld [vmem:[#allocation2 + $0xa8] sm:$0xff] }
 0x27f   : > { %4405 = vperm.xlu0 %6112, %v4195_v11   ;;  %v4133_v11 = vadd.f32 %v7183_v34, %v4090_v59  ;;  %v4057_v59 = vld [vmem:[#allocation2 + $0x90] sm:$0xff] }
 0x281   : > { %v4205_v36 = vmax.f32 %v4133_v11, 0.0  ;;  %v4059_v11 = vld [vmem:[#allocation2 + $0xa0] sm:$0xff] }
 0x2b6   : > { %v4246_v47 = vpop.permute.xlu1 %4245  ;;  %v4236_v25 = vpop.permute.xlu0 %4235 }
 0x2b7   : > { %v4415_v35 = vmul.f32 %v4246_v47, %v4199_v42  ;;  %v4413_v61 = vmul.f32 %v4236_v25, %v4197_v19  ;;  %v4054_v42 = vld [vmem:[#allocation2 + $0x78] sm:$0xff]  ;;  %v4053_v19 = vld [vmem:[#allocation2 + $0x70] sm:$0xff]  ;;  %v4138_v47 = vadd.f32 %v7183_v34, %v4095_v60  ;;  %v4137_v25 = vadd.f32 %v7183_v34, %v4094_v16 }
 0x2b8   : > { %v4097_v44 = vmul.f32 %v7176_v45, %v4054_v42  ;;  %v4096_v32 = vmul.f32 %v7176_v45, %v4053_v19 }
 0x2b9   : > { %v5091_v62 = vpack.c.bf16 %v4415_v35, %v4415_v35  ;;  %v5089_v49 = vpack.c.bf16 %v4413_v61, %v4413_v61  ;;  %v4208_v35 = vmax.f32 %v4136_v53, 0.0  ;;  %v4207_v61 = vmax.f32 %v4135_v2, 0.0 }
 0x2ba   : > { %v4251_v29 = vpop.permute.xlu1 %4250  ;;  %v4241_v22 = vpop.permute.xlu0 %4240  ;;  %v4103_v53 = vmul.f32 %v7176_v45, %v4060_v37  ;;  %v4102_v2 = vmul.f32 %v7176_v45, %v4059_v11 }
 0x2bb   : > { %4596 = vst.msk [vmem:[%s6272_s8 + $0x8] sm:$0xf] %vm4593_vm9, %v5091_v62  ;;  %4594 = vst.msk [vmem:[%s6272_s8] sm:$0xf] %vm4593_vm9, %v5089_v49  ;;  %v4416_v55 = vmul.f32 %v4251_v29, %v4200_v21  ;;  %v4414_v0 = vmul.f32 %v4241_v22, %v4198_v17  ;;  %v4056_v21 = vld [vmem:[#allocation2 + $0x88] sm:$0xff]  ;;  %v4055_v17 = vld [vmem:[#allocation2 + $0x80] sm:$0xff]  ;;  %v4140_v29 = vadd.f32 %v7183_v34, %v4097_v44 }
 0x2bc   : > { %v4139_v22 = vadd.f32 %v7183_v34, %v4096_v32 }
 0x2bd   : > { %v5092_v15 = vpack.c.bf16 %v4416_v55, %v4416_v55  ;;  %v5090_v26 = vpack.c.bf16 %v4414_v0, %v4414_v0  ;;  %v4210_v55 = vmax.f32 %v4138_v47, 0.0  ;;  %v4209_v0 = vmax.f32 %v4137_v25, 0.0 }
 0x2be   : > { %v4261_v5 = vpop.permute.xlu1 %4260 }
 0x2bf   : > { %4597 = vst.msk [vmem:[%s6272_s8 + $0xc] sm:$0xf] %vm4593_vm9, %v5092_v15  ;;  %4595 = vst.msk [vmem:[%s6272_s8 + $0x4] sm:$0xf] %vm4593_vm9, %v5090_v26  ;;  %v4418_v13 = vmul.f32 %v4261_v5, %v4202_v52  ;;  %v4099_v52 = vmul.f32 %v7176_v45, %v4056_v21  ;;  %v4212_v5 = vmax.f32 %v4140_v29, 0.0 }
 0x2c1   : > { %v5094_v3 = vpack.c.bf16 %v4418_v13, %v4418_v13  ;;  %v4101_v13 = vmul.f32 %v7176_v45, %v4058_v18 }
 0x2c2   : > { %v4256_v31 = vpop.permute.xlu0 %4255  ;;  %v4271_v9 = vpop.permute.xlu1 %4270 }
 0x2c3   : > { %v4417_v4 = vmul.f32 %v4256_v31, %v4201_v24  ;;  %4599 = vst.msk [vmem:[%s6272_s8 + $0x14] sm:$0xf] %vm4593_vm9, %v5094_v3  ;;  %v4420_v58 = vmul.f32 %v4271_v9, %v4204_v6  ;;  %v4098_v24 = vmul.f32 %v7176_v45, %v4055_v17  ;;  %v4211_v31 = vmax.f32 %v4139_v22, 0.0 }
 0x2c4   : > { %v4142_v6 = vadd.f32 %v7183_v34, %v4099_v52 }
 0x2c5   : > { %v5093_v20 = vpack.c.bf16 %v4417_v4, %v4417_v4  ;;  %v5096_v28 = vpack.c.bf16 %v4420_v58, %v4420_v58  ;;  %v4100_v4 = vmul.f32 %v7176_v45, %v4057_v59  ;;  %v4144_v58 = vadd.f32 %v7183_v34, %v4101_v13  ;;  %v4068_v13 = vld [vmem:[#allocation2 + $0xe8] sm:$0xff] }
 0x2c6   : > { %v4266_v43 = vpop.permute.xlu0 %4265  ;;  %v4281_v57 = vpop.permute.xlu1 %4280  ;;  %v4214_v9 = vmax.f32 %v4142_v6, 0.0 }
 0x2c7   : > { %4598 = vst.msk [vmem:[%s6272_s8 + $0x10] sm:$0xf] %vm4593_vm9, %v5093_v20  ;;  %v4419_v38 = vmul.f32 %v4266_v43, %v4203_v14  ;;  %4601 = vst.msk [vmem:[%s6272_s8 + $0x1c] sm:$0xf] %vm4593_vm9, %v5096_v28  ;;  %v4422_v41 = vmul.f32 %v4281_v57, %v4206_v39  ;;  %v4141_v14 = vadd.f32 %v7183_v34, %v4098_v24  ;;  %v4062_v39 = vld [vmem:[#allocation2 + $0xb8] sm:$0xff] }
 0x2c8   : > { %v4146_v57 = vadd.f32 %v7183_v34, %v4103_v53  ;;  %v4105_v47 = vmul.f32 %v7176_v45, %v4062_v39 }
 0x2c9   : > { %v5095_v12 = vpack.c.bf16 %v4419_v38, %v4419_v38  ;;  %v5098_v7 = vpack.c.bf16 %v4422_v41, %v4422_v41  ;;  %v4213_v43 = vmax.f32 %v4141_v14, 0.0  ;;  %v4143_v38 = vadd.f32 %v7183_v34, %v4100_v4  ;;  %v4067_v4 = vld [vmem:[#allocation2 + $0xe0] sm:$0xff] }
 0x2ca   : > { %v4276_v54 = vpop.permute.xlu0 %4275  ;;  %v4291_v62 = vpop.permute.xlu1 %4290  ;;  %v4216_v41 = vmax.f32 %v4144_v58, 0.0  ;;  %v4148_v29 = vadd.f32 %v7183_v34, %v4105_v47  ;;  %v4070_v58 = vld [vmem:[#allocation2 + $0xf8] sm:$0xff] }
 0x2cb   : > { %4600 = vst.msk [vmem:[%s6272_s8 + $0x18] sm:$0xf] %vm4593_vm9, %v5095_v12  ;;  %v4421_v50 = vmul.f32 %v4276_v54, %v4205_v36  ;;  %4603 = vst.msk [vmem:[%s6272_s8 + $0x24] sm:$0xf] %vm4593_vm9, %v5098_v7  ;;  %v4424_v10 = vmul.f32 %v4291_v62, %v4208_v35  ;;  %v4061_v36 = vld [vmem:[#allocation2 + $0xb0] sm:$0xff]  ;;  %v4145_v54 = vadd.f32 %v7183_v34, %v4102_v2  ;;  %v4064_v35 = vld [vmem:[#allocation2 + $0xc8] sm:$0xff] }
 0x2cc   : > { %v4104_v25 = vmul.f32 %v7176_v45, %v4061_v36  ;;  %v4218_v62 = vmax.f32 %v4146_v57, 0.0 }
 0x2cd   : > { %v5097_v56 = vpack.c.bf16 %v4421_v50, %v4421_v50  ;;  %v5100_v63 = vpack.c.bf16 %v4424_v10, %v4424_v10  ;;  %v4215_v50 = vmax.f32 %v4143_v38, 0.0  ;;  %v4107_v10 = vmul.f32 %v7176_v45, %v4064_v35  ;;  %v4069_v38 = vld [vmem:[#allocation2 + $0xf0] sm:$0xff] }
 0x2ce   : > { %v4286_v49 = vpop.permute.xlu0 %4285  ;;  %v4301_v15 = vpop.permute.xlu1 %4300  ;;  %v4147_v22 = vadd.f32 %v7183_v34, %v4104_v25 }
 0x2cf   : > { %4602 = vst.msk [vmem:[%s6272_s8 + $0x20] sm:$0xf] %vm4593_vm9, %v5097_v56  ;;  %v4423_v48 = vmul.f32 %v4286_v49, %v4207_v61  ;;  %4605 = vst.msk [vmem:[%s6272_s8 + $0x2c] sm:$0xf] %vm4593_vm9, %v5100_v63  ;;  %v4426_v27 = vmul.f32 %v4301_v15, %v4210_v55  ;;  %v4063_v61 = vld [vmem:[#allocation2 + $0xc0] sm:$0xff]  ;;  %v4217_v49 = vmax.f32 %v4145_v54, 0.0 }
 0x2d0   : > { %v4066_v55 = vld [vmem:[#allocation2 + $0xd8] sm:$0xff]  ;;  %v4220_v15 = vmax.f32 %v4148_v29, 0.0 }
 0x2d1   : > { %v5099_v23 = vpack.c.bf16 %v4423_v48, %v4423_v48  ;;  %v5102_v51 = vpack.c.bf16 %v4426_v27, %v4426_v27  ;;  %v4106_v48 = vmul.f32 %v7176_v45, %v4063_v61  ;;  %v4150_v27 = vadd.f32 %v7183_v34, %v4107_v10 }
 0x2d2   : > { %v4296_v26 = vpop.permute.xlu0 %4295  ;;  %v4311_v3 = vpop.permute.xlu1 %4310 }
 0x2d3   : > { %4604 = vst.msk [vmem:[%s6272_s8 + $0x28] sm:$0xf] %vm4593_vm9, %v5099_v23  ;;  %v4425_v8 = vmul.f32 %v4296_v26, %v4209_v0  ;;  %4607 = vst.msk [vmem:[%s6272_s8 + $0x34] sm:$0xf] %vm4593_vm9, %v5102_v51  ;;  %v4428_v60 = vmul.f32 %v4311_v3, %v4212_v5  ;;  %v4065_v0 = vld [vmem:[#allocation2 + $0xd0] sm:$0xff]  ;;  %v4219_v26 = vmax.f32 %v4147_v22, 0.0  ;;  %v4109_v5 = vmul.f32 %v7176_v45, %v4066_v55 }
 0x2d5   : > { %v5101_v33 = vpack.c.bf16 %v4425_v8, %v4425_v8  ;;  %v5104_v42 = vpack.c.bf16 %v4428_v60, %v4428_v60  ;;  %v4149_v8 = vadd.f32 %v7183_v34, %v4106_v48  ;;  %v4152_v3 = vadd.f32 %v7183_v34, %v4109_v5 }
 0x2d6   : > { %v4306_v20 = vpop.permute.xlu0 %4305  ;;  %v4321_v28 = vpop.permute.xlu1 %4320  ;;  %v4222_v60 = vmax.f32 %v4150_v27, 0.0 }
 0x2d7   : > { %4606 = vst.msk [vmem:[%s6272_s8 + $0x30] sm:$0xf] %vm4593_vm9, %v5101_v33  ;;  %v4427_v16 = vmul.f32 %v4306_v20, %v4211_v31  ;;  %4609 = vst.msk [vmem:[%s6272_s8 + $0x3c] sm:$0xf] %vm4593_vm9, %v5104_v42  ;;  %v4430_v44 = vmul.f32 %v4321_v28, %v4214_v9  ;;  %v4108_v31 = vmul.f32 %v7176_v45, %v4065_v0  ;;  %v4224_v28 = vmax.f32 %v4152_v3, 0.0 }
 0x2d8   : > { %v4111_v9 = vmul.f32 %v7176_v45, %v4068_v13  ;;  %v4232_v13 = vmax.f32 %v7196_v1, 0.0 }
 0x2d9   : > { %v5103_v19 = vpack.c.bf16 %v4427_v16, %v4427_v16  ;;  %v5106_v21 = vpack.c.bf16 %v4430_v44, %v4430_v44  ;;  %v4151_v20 = vadd.f32 %v7183_v34, %v4108_v31  ;;  %v4221_v16 = vmax.f32 %v4149_v8, 0.0 }
 0x2da   : > { %v4316_v12 = vpop.permute.xlu0 %4315  ;;  %v4331_v7 = vpop.permute.xlu1 %4330  ;;  %v4154_v57 = vadd.f32 %v7183_v34, %v4111_v9  ;;  %v4113_v44 = vmul.f32 %v7176_v45, %v4070_v58 }
 0x2db   : > { %4608 = vst.msk [vmem:[%s6272_s8 + $0x38] sm:$0xf] %vm4593_vm9, %v5103_v19  ;;  %v4429_v32 = vmul.f32 %v4316_v12, %v4213_v43  ;;  %4611 = vst.msk [vmem:[%s6272_s8 + $0x44] sm:$0xf] %vm4593_vm9, %v5106_v21  ;;  %v4432_v52 = vmul.f32 %v4331_v7, %v4216_v41  ;;  %v4110_v43 = vmul.f32 %v7176_v45, %v4067_v4  ;;  %v4223_v12 = vmax.f32 %v4151_v20, 0.0 }
 0x2dc   : > { %v4226_v21 = vmax.f32 %v4154_v57, 0.0 }
 0x2dd   : > { %v5105_v17 = vpack.c.bf16 %v4429_v32, %v4429_v32  ;;  %v5108_v18 = vpack.c.bf16 %v4432_v52, %v4432_v52  ;;  %v4153_v54 = vadd.f32 %v7183_v34, %v4110_v43  ;;  %v4112_v32 = vmul.f32 %v7176_v45, %v4069_v38 }
 0x2de   : > { %v4326_v56 = vpop.permute.xlu0 %4325  ;;  %v4341_v63 = vpop.permute.xlu1 %4340 }
 0x2df   : > { %4610 = vst.msk [vmem:[%s6272_s8 + $0x40] sm:$0xf] %vm4593_vm9, %v5105_v17  ;;  %v4431_v24 = vmul.f32 %v4326_v56, %v4215_v50  ;;  %4613 = vst.msk [vmem:[%s6272_s8 + $0x4c] sm:$0xf] %vm4593_vm9, %v5108_v18  ;;  %v4434_v6 = vmul.f32 %v4341_v63, %v4218_v62  ;;  %v4225_v17 = vmax.f32 %v4153_v54, 0.0  ;;  %v4156_v62 = vadd.f32 %v7183_v34, %v4113_v44 }
 0x2e1   : > { %v5107_v59 = vpack.c.bf16 %v4431_v24, %v4431_v24  ;;  %v5110_v37 = vpack.c.bf16 %v4434_v6, %v4434_v6  ;;  %v4228_v48 = vmax.f32 %v4156_v62, 0.0 }
 0x2e2   : > { %v4336_v23 = vpop.permute.xlu0 %4335  ;;  %v4351_v51 = vpop.permute.xlu1 %4350 }
 0x2e3   : > { %4612 = vst.msk [vmem:[%s6272_s8 + $0x48] sm:$0xf] %vm4593_vm9, %v5107_v59  ;;  %v4433_v14 = vmul.f32 %v4336_v23, %v4217_v49  ;;  %4615 = vst.msk [vmem:[%s6272_s8 + $0x54] sm:$0xf] %vm4593_vm9, %v5110_v37  ;;  %v4436_v53 = vmul.f32 %v4351_v51, %v4220_v15  ;;  %v4155_v49 = vadd.f32 %v7183_v34, %v4112_v32  ;;  %v4230_v15 = vmax.f32 %v7187_v46, 0.0 }
 0x2e4   : > { %v4231_v46 = vmax.f32 %v7199_v30, 0.0 }
 0x2e5   : > { %v5109_v11 = vpack.c.bf16 %v4433_v14, %v4433_v14  ;;  %v5112_v39 = vpack.c.bf16 %v4436_v53, %v4436_v53  ;;  %v4227_v55 = vmax.f32 %v4155_v49, 0.0 }
 0x2e6   : > { %v4346_v33 = vpop.permute.xlu0 %4345  ;;  %v4361_v42 = vpop.permute.xlu1 %4360 }
 0x2e7   : > { %4614 = vst.msk [vmem:[%s6272_s8 + $0x50] sm:$0xf] %vm4593_vm9, %v5109_v11  ;;  %v4435_v2 = vmul.f32 %v4346_v33, %v4219_v26  ;;  %4617 = vst.msk [vmem:[%s6272_s8 + $0x5c] sm:$0xf] %vm4593_vm9, %v5112_v39  ;;  %v4438_v47 = vmul.f32 %v4361_v42, %v4222_v60  ;;  %v4229_v26 = vmax.f32 %v7190_v40, 0.0 }
 0x2e9   : > { %v5111_v36 = vpack.c.bf16 %v4435_v2, %v4435_v2  ;;  %v5114_v41 = vpack.c.bf16 %v4438_v47, %v4438_v47 }
 0x2ea   : > { %v4356_v19 = vpop.permute.xlu0 %4355  ;;  %v4371_v35 = vpop.permute.xlu1 %4370 }
 0x2eb   : > { %4616 = vst.msk [vmem:[%s6272_s8 + $0x58] sm:$0xf] %vm4593_vm9, %v5111_v36  ;;  %v4437_v25 = vmul.f32 %v4356_v19, %v4221_v16  ;;  %4619 = vst.msk [vmem:[%s6272_s8 + $0x64] sm:$0xf] %vm4593_vm9, %v5114_v41  ;;  %v4440_v7 = vmul.f32 %v4371_v35, %v4224_v28 }
 0x2ed   : > { %v5113_v50 = vpack.c.bf16 %v4437_v25, %v4437_v25  ;;  %v5116_v45 = vpack.c.bf16 %v4440_v7, %v4440_v7 }
 0x2ee   : > { %v4366_v61 = vpop.permute.xlu0 %4365  ;;  %v4381_v22 = vpop.permute.xlu1 %4380 }
 0x2ef   : > { %4618 = vst.msk [vmem:[%s6272_s8 + $0x60] sm:$0xf] %vm4593_vm9, %v5113_v50  ;;  %v4439_v56 = vmul.f32 %v4366_v61, %v4223_v12  ;;  %4621 = vst.msk [vmem:[%s6272_s8 + $0x6c] sm:$0xf] %vm4593_vm9, %v5116_v45  ;;  %v4442_v24 = vmul.f32 %v4381_v22, %v4226_v21 }
 0x2f1   : > { %v5115_v29 = vpack.c.bf16 %v4439_v56, %v4439_v56  ;;  %v5118_v0 = vpack.c.bf16 %v4442_v24, %v4442_v24 }
 0x2f2   : > { %v4376_v52 = vpop.permute.xlu0 %4375  ;;  %v4391_v59 = vpop.permute.xlu1 %4390 }
 0x2f3   : > { %4620 = vst.msk [vmem:[%s6272_s8 + $0x68] sm:$0xf] %vm4593_vm9, %v5115_v29  ;;  %v4441_v10 = vmul.f32 %v4376_v52, %v4225_v17  ;;  %4623 = vst.msk [vmem:[%s6272_s8 + $0x74] sm:$0xf] %vm4593_vm9, %v5118_v0  ;;  %v4444_v34 = vmul.f32 %v4391_v59, %v4228_v48 }
 0x2f5   : > { %v5117_v18 = vpack.c.bf16 %v4441_v10, %v4441_v10  ;;  %v5120_v5 = vpack.c.bf16 %v4444_v34, %v4444_v34 }
 0x2f6   : > { %v4386_v63 = vpop.permute.xlu0 %4385  ;;  %v4401_v6 = vpop.permute.xlu1 %4400 }
 0x2f7   : > { %4622 = vst.msk [vmem:[%s6272_s8 + $0x70] sm:$0xf] %vm4593_vm9, %v5117_v18  ;;  %v4443_v23 = vmul.f32 %v4386_v63, %v4227_v55  ;;  %4625 = vst.msk [vmem:[%s6272_s8 + $0x7c] sm:$0xf] %vm4593_vm9, %v5120_v5  ;;  %v4446_v27 = vmul.f32 %v4401_v6, %v4230_v15 }
 0x2f9   : > { %v5119_v31 = vpack.c.bf16 %v4443_v23, %v4443_v23  ;;  %v5122_v4 = vpack.c.bf16 %v4446_v27, %v4446_v27 }
 0x2fa   : > { %v4396_v14 = vpop.permute.xlu0 %4395  ;;  %v4411_v40 = vpop.permute.xlu1 %4410 }
 0x2fb   : > { %4624 = vst.msk [vmem:[%s6272_s8 + $0x78] sm:$0xf] %vm4593_vm9, %v5119_v31  ;;  %v4445_v8 = vmul.f32 %v4396_v14, %v4229_v26  ;;  %4627 = vst.msk [vmem:[%s6272_s8 + $0x84] sm:$0xf] %vm4593_vm9, %v5122_v4  ;;  %v4448_v51 = vmul.f32 %v4411_v40, %v4232_v13 }
 0x2fd   : > { %v5121_v37 = vpack.c.bf16 %v4445_v8, %v4445_v8  ;;  %v5124_v3 = vpack.c.bf16 %v4448_v51, %v4448_v51 }
 0x2fe   : > { %v4406_v11 = vpop.permute.xlu0 %4405 }
 0x2ff   : > { %4626 = vst.msk [vmem:[%s6272_s8 + $0x80] sm:$0xf] %vm4593_vm9, %v5121_v37  ;;  %v4447_v33 = vmul.f32 %v4406_v11, %v4231_v46  ;;  %4629 = vst.msk [vmem:[%s6272_s8 + $0x8c] sm:$0xf] %vm4593_vm9, %v5124_v3 }
 0x301   : > { %v5123_v20 = vpack.c.bf16 %v4447_v33, %v4447_v33 }
 0x303   : > { %4628 = vst.msk [vmem:[%s6272_s8 + $0x88] sm:$0xf] %vm4593_vm9, %v5123_v20 }
 0x304 PF: > { %s15_s24 = sadd.s32 1, %s6168_s24   ;;  %s7372_s27 = sld [smem:[#allocation3_spill]] }
 0x305   : > { %p12_p12 = scmp.ge.s32.totalorder %s15_s24, 152   ;;  %s7373_s9 = sld [smem:[#allocation4_spill]] }
 0x306   : > { %s7374_s18 = smov %s6156_s21  ;;  %s7375_s19 = smov %s6160_s22 }
 0x307   : > { %s7376_s20 = smov %s6164_s23  ;;  %s7377_s21 = smov %s7381_s25 }
 0x308   :  { %14 = sbr.rel (!%p12_p12) target bundleno = 4 (0x4), region = 92 }
 0x30a   : > { %s7378_s22 = smov %s7372_s27 }
 0x30b   : > { %s7379_s23 = smov %s7373_s9 }

</bundles_post_ra>
